<compile_context>
chip_gen: v5e
topology: v5e:2x2
jax: 0.10.0
libtpu: 0.0.40
codegen_flags: <defaults>
</compile_context>

<pallas_src>
import numpy as np
import jax
import jax.numpy as jnp
from jax import lax
from jax.experimental import pallas as pl
from jax.experimental.pallas import tpu as pltpu  # noqa: F401  (TPU backend)

# --------------------------- configuration ----------------------------------
INPUT_SIZE = 200      # small version of the default 500 (all shapes stay valid)
LEAD_N = 12
LABEL_SIZE = 7
HIDDEN_SIZE = 32
BATCH = 2

KSIZE, STRIDE, PAD, DIL = 7, 2, 3, 2
NEG_SLOPE = 0.01      # nn.LeakyReLU default
BN_EPS = 1e-5

C1 = LEAD_N * 4       # conv1/conv2 out channels = 48
C3 = LEAD_N * 6       # conv3 out channels = 72
CIN1_PAD = 16         # conv1 input channels 12 -> 16 (8-aligned sublane stack)


def _conv_len(l):
    return (l + 2 * PAD - DIL * (KSIZE - 1) - 1) // STRIDE + 1


L1 = _conv_len(INPUT_SIZE)      # 97
P1 = L1 // 2                    # 48
L2 = _conv_len(P1)              # 21
P2 = L2 // 2                    # 10
L3 = _conv_len(P2)              # 2
P3 = L3 // 2                    # 1
FEAT = LEAD_N * 6 * P3          # 72
PH1 = (INPUT_SIZE + 2 * PAD + 1) // 2   # even-phase length of padded input = 103

assert L3 == 2 and P3 == 1 and P1 % 2 == 0 and P2 % 2 == 0
assert PH1 >= L1 + KSIZE - 1


def _pool_phase_matrix(l_conv, l_next):
    """AvgPool1d(2) + zero-pad(3) + even-phase extraction for the next
    stride-2/dilation-2 conv, as one (l_conv, l_next+K-1) right-multiply."""
    p_len = l_conv // 2
    n_odd = p_len // 2
    ph_len = l_next + KSIZE - 1
    assert ph_len == n_odd + 3
    t = np.zeros((l_conv, ph_len), np.float32)
    for j in range(n_odd):
        # phase[j+2] = pooled[2j+1] = 0.5*(y[4j+2] + y[4j+3])
        t[4 * j + 2, j + 2] = 0.5
        t[4 * j + 3, j + 2] = 0.5
    return t


def _t_mats(batch):
    """Pool+phase matrices for the batch-interleaved (pos-major, batch-minor)
    lane layout: kron(T, I_B)."""
    eye = np.eye(batch, dtype=np.float32)
    t1 = np.kron(_pool_phase_matrix(L1, L2), eye)   # (L1*B, 27*B)
    t2 = np.kron(_pool_phase_matrix(L2, L3), eye)   # (L2*B, 8*B)
    return jnp.asarray(t1), jnp.asarray(t2)


# ----------------------------- Pallas kernel ---------------------------------
def conv_critic_kernel(x_ref, t1_ref, t2_ref,
                       w1_ref, b1_ref, g1_ref, be1_ref,
                       w2_ref, b2_ref, g2_ref, be2_ref,
                       w3_ref, b3_ref,
                       fcw_ref, fcb_ref, lab_ref, lew_ref, leb_ref,
                       ow1_ref, ow2_ref, ob_ref, o_ref):
    # Layout: activations are (channels, position*B) with columns interleaved
    # position-major / batch-minor.  Weights are block-diagonal (M, K*C_in).
    nb = lab_ref.shape[1]        # static batch size
    n1 = L1 * nb                 # 194
    n2 = L2 * nb                 # 42
    n3 = L3 * nb                 # 4

    def conv(phase, w_ref, n_out):
        # im2col in vregs: stack the K tap-shifted lane windows along the
        # sublane axis, then ONE MXU contraction for all taps/channels/batch.
        rhs = jnp.concatenate(
            [phase[:, k * nb:k * nb + n_out] for k in range(KSIZE)], axis=0)
        return jnp.dot(w_ref[...], rhs, preferred_element_type=jnp.float32)

    def bias_bn(y, b_ref, g_ref, be_ref):
        # conv bias, then BatchNorm1d with batch stats over (batch, length).
        y = y + b_ref[...]
        inv_n = 1.0 / float(y.shape[1])
        mean = jnp.sum(y, axis=1, keepdims=True) * inv_n
        var = jnp.sum(jnp.square(y - mean), axis=1, keepdims=True) * inv_n
        scale = lax.rsqrt(var + BN_EPS) * g_ref[...]
        return (y - mean) * scale + be_ref[...]

    def leaky(v):
        return jnp.where(v >= 0, v, NEG_SLOPE * v)

    # ---- conv trunk -----------------------------------------------------
    ph1 = x_ref[...]                                                   # (16, 206)
    y1 = bias_bn(conv(ph1, w1_ref, n1), b1_ref, g1_ref, be1_ref)       # (48, 194)
    ph2 = jnp.dot(y1, t1_ref[...], preferred_element_type=jnp.float32)  # (48, 54)
    y2 = bias_bn(conv(ph2, w2_ref, n2), b2_ref, g2_ref, be2_ref)       # (48, 42)
    ph3 = jnp.dot(y2, t2_ref[...], preferred_element_type=jnp.float32)  # (48, 16)
    y3 = conv(ph3, w3_ref, n3) + b3_ref[...]                           # (72, 4)
    # AvgPool1d(2): L3=2 -> 1; columns are [pos*B + b]
    feat = 0.5 * (y3[:, 0:nb] + y3[:, nb:2 * nb])                      # (72, B)

    # ---- head (transposed: hidden on sublanes, batch on lanes) ----------
    f = leaky(feat)
    h1 = jnp.dot(fcw_ref[...], f, preferred_element_type=jnp.float32) + fcb_ref[...]
    h2 = jnp.dot(lew_ref[...], lab_ref[...],
                 preferred_element_type=jnp.float32) + leb_ref[...]
    # concat([h1, h2]) @ W_out.T  ==  W_out[:, :H] @ h1  +  W_out[:, H:] @ h2
    z = (jnp.dot(ow1_ref[...], leaky(h1), preferred_element_type=jnp.float32)
         + jnp.dot(ow2_ref[...], leaky(h2), preferred_element_type=jnp.float32)
         + ob_ref[...])
    o_ref[...] = jax.nn.sigmoid(z)                                     # (1, B)


# ----------------------------- weight packing (hoisted) ----------------------
def _blockdiag_taps(w, cin_pad=None):
    """PyTorch grouped Conv1d weight (C_out, C_in/groups, K) -> lane-dense
    block-diagonal (C_out, K * C_in_padded) per-tap-stacked matrix."""
    c_out, cpg, k = w.shape
    m = c_out // LEAD_N
    w5 = jnp.asarray(w, jnp.float32).reshape(LEAD_N, m, cpg, k)   # (g, m, c, k)
    eye = jnp.eye(LEAD_N, dtype=jnp.float32)
    bd = jnp.einsum('gmck,gh->kgmhc', w5, eye)                    # (K, g, m, h, c)
    bd = bd.reshape(k, c_out, LEAD_N * cpg)
    if cin_pad is not None and cin_pad > LEAD_N * cpg:
        bd = jnp.pad(bd, ((0, 0), (0, 0), (0, cin_pad - LEAD_N * cpg)))
    return jnp.transpose(bd, (1, 0, 2)).reshape(c_out, -1)


def prep_params(params, batch):
    """Runs ONCE per weight set (outside the forward path)."""
    t1, t2 = _t_mats(batch)
    h = HIDDEN_SIZE
    return dict(
        t1=t1, t2=t2,
        w1=_blockdiag_taps(params["conv1_w"], cin_pad=CIN1_PAD),   # (48, 112)
        b1=params["conv1_b"].reshape(C1, 1),
        g1=params["bn1_g"].reshape(C1, 1),
        be1=params["bn1_b"].reshape(C1, 1),
        w2=_blockdiag_taps(params["conv2_w"]),                     # (48, 336)
        b2=params["conv2_b"].reshape(C1, 1),
        g2=params["bn2_g"].reshape(C1, 1),
        be2=params["bn2_b"].reshape(C1, 1),
        w3=_blockdiag_taps(params["conv3_w"]),                     # (72, 336)
        b3=params["conv3_b"].reshape(C3, 1),
        fcw=params["fc_w"],                                        # (H, 72)
        fcb=params["fc_b"].reshape(h, 1),
        lew=params["le_w"],                                        # (H, 7)
        leb=params["le_b"].reshape(h, 1),
        ow1=params["out_w"][:, :h],                                # (1, H)
        ow2=params["out_w"][:, h:],                                # (1, H)
        ob=params["out_b"].reshape(1, 1),
    )


# ----------------------------- forward ---------------------------------------
def conv_critic_forward(packed, sequence, label):
    # sequence: (B, L, lead_n) ; label: (B, label_size)
    b = sequence.shape[0]
    x = jnp.transpose(sequence, (0, 2, 1))                     # NCL (B,12,200)
    xp = jnp.pad(x, ((0, 0), (0, 0), (PAD, PAD)))              # (B,12,206)
    xe = xp[:, :, ::2]                                         # even phase (B,12,103)
    # interleave: (channels, pos*B) position-major / batch-minor
    xi = jnp.transpose(xe, (1, 2, 0)).reshape(LEAD_N, PH1 * b)
    xi = jnp.pad(xi, ((0, CIN1_PAD - LEAD_N), (0, 0)))         # (16, 206)
    lab_t = jnp.transpose(label, (1, 0))                       # (7, B)

    out = pl.pallas_call(
        conv_critic_kernel,
        out_shape=jax.ShapeDtypeStruct((1, b), jnp.float32),
    )(xi, packed["t1"], packed["t2"],
      packed["w1"], packed["b1"], packed["g1"], packed["be1"],
      packed["w2"], packed["b2"], packed["g2"], packed["be2"],
      packed["w3"], packed["b3"],
      packed["fcw"], packed["fcb"], lab_t, packed["lew"], packed["leb"],
      packed["ow1"], packed["ow2"], packed["ob"])
    return out.reshape(b, 1)


# ----------------------------- parameters -------------------------------------
def conf_out_size(input_size):
    first = int((input_size - 7) / 2 + 1) // 2
    second = int((first - 7) // 2 + 1) // 2
    third = int((second - 7) // 2 + 1) // 2
    return int(LEAD_N * 6 * third)


def init_params(key):
    F = conf_out_size(INPUT_SIZE)
    assert F == FEAT
    H = HIDDEN_SIZE
    ks = jax.random.split(key, 6)

    def w(k, shape, fan_in):
        return jax.random.normal(k, shape, jnp.float32) / jnp.sqrt(float(fan_in))

    return {
        # Conv1d weights in PyTorch layout (C_out, C_in/groups, K)
        "conv1_w": w(ks[0], (C1, 1, KSIZE), 1 * KSIZE),
        "conv1_b": jnp.zeros((C1,), jnp.float32),
        "bn1_g": jnp.ones((C1,), jnp.float32),
        "bn1_b": jnp.zeros((C1,), jnp.float32),
        "conv2_w": w(ks[1], (C1, 4, KSIZE), 4 * KSIZE),
        "conv2_b": jnp.zeros((C1,), jnp.float32),
        "bn2_g": jnp.ones((C1,), jnp.float32),
        "bn2_b": jnp.zeros((C1,), jnp.float32),
        "conv3_w": w(ks[2], (C3, 4, KSIZE), 4 * KSIZE),
        "conv3_b": jnp.zeros((C3,), jnp.float32),
        # Linear layers in PyTorch (out, in) layout
        "fc_w": w(ks[3], (H, F), F),
        "fc_b": jnp.zeros((H,), jnp.float32),
        "le_w": w(ks[4], (H, LABEL_SIZE), LABEL_SIZE),
        "le_b": jnp.zeros((H,), jnp.float32),
        "out_w": w(ks[5], (1, 2 * H), 2 * H),
        "out_b": jnp.zeros((1,), jnp.float32),
    }


# ----------------------------- main --------------------------------------------
if __name__ == "__main__":
    key = jax.random.PRNGKey(0)
    k_seq, k_lab, k_par = jax.random.split(key, 3)

    sequence = jax.random.normal(k_seq, (BATCH, INPUT_SIZE, LEAD_N), jnp.float32)
    label = jax.random.normal(k_lab, (BATCH, LABEL_SIZE), jnp.float32)
    params = init_params(k_par)

    packed = prep_params(params, BATCH)        # weight packing hoisted: runs once
    fwd = jax.jit(conv_critic_forward)

    out = jax.block_until_ready(fwd(packed, sequence, label))

    assert out.shape == (BATCH, 1), out.shape
    assert bool(jnp.all(jnp.isfinite(out)))
    assert bool(jnp.all((out > 0.0) & (out < 1.0)))
    print("KERNEL_OK")
</pallas_src>

<mosaic_0001>
module attributes {stable_mosaic.version = 11 : i64} {
  func.func @conv_critic_kernel(%arg0: memref<16x206xf32, #tpu.memory_space<vmem>>, %arg1: memref<194x54xf32, #tpu.memory_space<vmem>>, %arg2: memref<42x16xf32, #tpu.memory_space<vmem>>, %arg3: memref<48x112xf32, #tpu.memory_space<vmem>>, %arg4: memref<48x1xf32, #tpu.memory_space<vmem>>, %arg5: memref<48x1xf32, #tpu.memory_space<vmem>>, %arg6: memref<48x1xf32, #tpu.memory_space<vmem>>, %arg7: memref<48x336xf32, #tpu.memory_space<vmem>>, %arg8: memref<48x1xf32, #tpu.memory_space<vmem>>, %arg9: memref<48x1xf32, #tpu.memory_space<vmem>>, %arg10: memref<48x1xf32, #tpu.memory_space<vmem>>, %arg11: memref<72x336xf32, #tpu.memory_space<vmem>>, %arg12: memref<72x1xf32, #tpu.memory_space<vmem>>, %arg13: memref<32x72xf32, #tpu.memory_space<vmem>>, %arg14: memref<32x1xf32, #tpu.memory_space<vmem>>, %arg15: memref<7x2xf32, #tpu.memory_space<vmem>>, %arg16: memref<32x7xf32, #tpu.memory_space<vmem>>, %arg17: memref<32x1xf32, #tpu.memory_space<vmem>>, %arg18: memref<1x32xf32, #tpu.memory_space<vmem>>, %arg19: memref<1x32xf32, #tpu.memory_space<vmem>>, %arg20: memref<1x1xf32, #tpu.memory_space<vmem>>, %arg21: memref<1x2xf32, #tpu.memory_space<vmem>>) attributes {dimension_semantics = [], scalar_prefetch = 0 : i64, scratch_operands = 0 : i64, tpu.core_type = #tpu.core_type<tc>} {
    %c0 = arith.constant 0 : index
    %c0_0 = arith.constant 0 : index
    %0 = vector.load %arg0[%c0, %c0_0] : memref<16x206xf32, #tpu.memory_space<vmem>>, vector<16x206xf32>
    %1 = vector.extract_strided_slice %0 {offsets = [0, 0], sizes = [16, 194], strides = [1, 1]} : vector<16x206xf32> to vector<16x194xf32>
    %2 = vector.extract_strided_slice %0 {offsets = [0, 2], sizes = [16, 194], strides = [1, 1]} : vector<16x206xf32> to vector<16x194xf32>
    %3 = vector.extract_strided_slice %0 {offsets = [0, 4], sizes = [16, 194], strides = [1, 1]} : vector<16x206xf32> to vector<16x194xf32>
    %4 = vector.extract_strided_slice %0 {offsets = [0, 6], sizes = [16, 194], strides = [1, 1]} : vector<16x206xf32> to vector<16x194xf32>
    %5 = vector.extract_strided_slice %0 {offsets = [0, 8], sizes = [16, 194], strides = [1, 1]} : vector<16x206xf32> to vector<16x194xf32>
    %6 = vector.extract_strided_slice %0 {offsets = [0, 10], sizes = [16, 194], strides = [1, 1]} : vector<16x206xf32> to vector<16x194xf32>
    %7 = vector.extract_strided_slice %0 {offsets = [0, 12], sizes = [16, 194], strides = [1, 1]} : vector<16x206xf32> to vector<16x194xf32>
    %8 = tpu.concatenate %1, %2, %3, %4, %5, %6, %7 in 0 : vector<16x194xf32>, vector<16x194xf32>, vector<16x194xf32>, vector<16x194xf32>, vector<16x194xf32>, vector<16x194xf32>, vector<16x194xf32> -> vector<112x194xf32>
    %c0_1 = arith.constant 0 : index
    %c0_2 = arith.constant 0 : index
    %9 = vector.load %arg3[%c0_1, %c0_2] : memref<48x112xf32, #tpu.memory_space<vmem>>, vector<48x112xf32>
    %cst = arith.constant dense<0.000000e+00> : vector<48x194xf32>
    %10 = tpu.matmul %9, %8, %cst {dimension_numbers = #tpu.dot_dimension_numbers<[1], [0], [0], [1], [0, 0, 1, 1], [], []>} : vector<48x112xf32>, vector<112x194xf32>, vector<48x194xf32> -> vector<48x194xf32>
    %c0_3 = arith.constant 0 : index
    %c0_4 = arith.constant 0 : index
    %11 = vector.load %arg4[%c0_3, %c0_4] : memref<48x1xf32, #tpu.memory_space<vmem>>, vector<48x1xf32>
    %12 = vector.broadcast %11 : vector<48x1xf32> to vector<48x194xf32>
    %13 = arith.addf %10, %12 : vector<48x194xf32>
    %cst_5 = arith.constant dense<0.000000e+00> : vector<48xf32>
    %14 = vector.multi_reduction <add>, %13, %cst_5 [1] : vector<48x194xf32> to vector<48xf32>
    %15 = vector.shape_cast %14 : vector<48xf32> to vector<48x1xf32>
    %cst_6 = arith.constant 0.00515463902 : f32
    %16 = vector.broadcast %cst_6 : f32 to vector<48x1xf32>
    %17 = arith.mulf %15, %16 : vector<48x1xf32>
    %18 = vector.broadcast %17 : vector<48x1xf32> to vector<48x194xf32>
    %19 = arith.subf %13, %18 : vector<48x194xf32>
    %20 = arith.mulf %19, %19 : vector<48x194xf32>
    %cst_7 = arith.constant dense<0.000000e+00> : vector<48xf32>
    %21 = vector.multi_reduction <add>, %20, %cst_7 [1] : vector<48x194xf32> to vector<48xf32>
    %22 = vector.shape_cast %21 : vector<48xf32> to vector<48x1xf32>
    %cst_8 = arith.constant 0.00515463902 : f32
    %23 = vector.broadcast %cst_8 : f32 to vector<48x1xf32>
    %24 = arith.mulf %22, %23 : vector<48x1xf32>
    %cst_9 = arith.constant 9.99999974E-6 : f32
    %25 = vector.broadcast %cst_9 : f32 to vector<48x1xf32>
    %26 = arith.addf %24, %25 : vector<48x1xf32>
    %27 = math.rsqrt %26 : vector<48x1xf32>
    %c0_10 = arith.constant 0 : index
    %c0_11 = arith.constant 0 : index
    %28 = vector.load %arg5[%c0_10, %c0_11] : memref<48x1xf32, #tpu.memory_space<vmem>>, vector<48x1xf32>
    %29 = arith.mulf %27, %28 : vector<48x1xf32>
    %30 = vector.broadcast %17 : vector<48x1xf32> to vector<48x194xf32>
    %31 = arith.subf %13, %30 : vector<48x194xf32>
    %32 = vector.broadcast %29 : vector<48x1xf32> to vector<48x194xf32>
    %33 = arith.mulf %31, %32 : vector<48x194xf32>
    %c0_12 = arith.constant 0 : index
    %c0_13 = arith.constant 0 : index
    %34 = vector.load %arg6[%c0_12, %c0_13] : memref<48x1xf32, #tpu.memory_space<vmem>>, vector<48x1xf32>
    %35 = vector.broadcast %34 : vector<48x1xf32> to vector<48x194xf32>
    %36 = arith.addf %33, %35 : vector<48x194xf32>
    %c0_14 = arith.constant 0 : index
    %c0_15 = arith.constant 0 : index
    %37 = vector.load %arg1[%c0_14, %c0_15] : memref<194x54xf32, #tpu.memory_space<vmem>>, vector<194x54xf32>
    %cst_16 = arith.constant dense<0.000000e+00> : vector<48x54xf32>
    %38 = tpu.matmul %36, %37, %cst_16 {dimension_numbers = #tpu.dot_dimension_numbers<[1], [0], [0], [1], [0, 0, 1, 1], [], []>} : vector<48x194xf32>, vector<194x54xf32>, vector<48x54xf32> -> vector<48x54xf32>
    %39 = vector.extract_strided_slice %38 {offsets = [0, 0], sizes = [48, 42], strides = [1, 1]} : vector<48x54xf32> to vector<48x42xf32>
    %40 = vector.extract_strided_slice %38 {offsets = [0, 2], sizes = [48, 42], strides = [1, 1]} : vector<48x54xf32> to vector<48x42xf32>
    %41 = vector.extract_strided_slice %38 {offsets = [0, 4], sizes = [48, 42], strides = [1, 1]} : vector<48x54xf32> to vector<48x42xf32>
    %42 = vector.extract_strided_slice %38 {offsets = [0, 6], sizes = [48, 42], strides = [1, 1]} : vector<48x54xf32> to vector<48x42xf32>
    %43 = vector.extract_strided_slice %38 {offsets = [0, 8], sizes = [48, 42], strides = [1, 1]} : vector<48x54xf32> to vector<48x42xf32>
    %44 = vector.extract_strided_slice %38 {offsets = [0, 10], sizes = [48, 42], strides = [1, 1]} : vector<48x54xf32> to vector<48x42xf32>
    %45 = vector.extract_strided_slice %38 {offsets = [0, 12], sizes = [48, 42], strides = [1, 1]} : vector<48x54xf32> to vector<48x42xf32>
    %46 = tpu.concatenate %39, %40, %41, %42, %43, %44, %45 in 0 : vector<48x42xf32>, vector<48x42xf32>, vector<48x42xf32>, vector<48x42xf32>, vector<48x42xf32>, vector<48x42xf32>, vector<48x42xf32> -> vector<336x42xf32>
    %c0_17 = arith.constant 0 : index
    %c0_18 = arith.constant 0 : index
    %47 = vector.load %arg7[%c0_17, %c0_18] : memref<48x336xf32, #tpu.memory_space<vmem>>, vector<48x336xf32>
    %cst_19 = arith.constant dense<0.000000e+00> : vector<48x42xf32>
    %48 = tpu.matmul %47, %46, %cst_19 {dimension_numbers = #tpu.dot_dimension_numbers<[1], [0], [0], [1], [0, 0, 1, 1], [], []>} : vector<48x336xf32>, vector<336x42xf32>, vector<48x42xf32> -> vector<48x42xf32>
    %c0_20 = arith.constant 0 : index
    %c0_21 = arith.constant 0 : index
    %49 = vector.load %arg8[%c0_20, %c0_21] : memref<48x1xf32, #tpu.memory_space<vmem>>, vector<48x1xf32>
    %50 = vector.broadcast %49 : vector<48x1xf32> to vector<48x42xf32>
    %51 = arith.addf %48, %50 : vector<48x42xf32>
    %cst_22 = arith.constant dense<0.000000e+00> : vector<48xf32>
    %52 = vector.multi_reduction <add>, %51, %cst_22 [1] : vector<48x42xf32> to vector<48xf32>
    %53 = vector.shape_cast %52 : vector<48xf32> to vector<48x1xf32>
    %cst_23 = arith.constant 0.0238095243 : f32
    %54 = vector.broadcast %cst_23 : f32 to vector<48x1xf32>
    %55 = arith.mulf %53, %54 : vector<48x1xf32>
    %56 = vector.broadcast %55 : vector<48x1xf32> to vector<48x42xf32>
    %57 = arith.subf %51, %56 : vector<48x42xf32>
    %58 = arith.mulf %57, %57 : vector<48x42xf32>
    %cst_24 = arith.constant dense<0.000000e+00> : vector<48xf32>
    %59 = vector.multi_reduction <add>, %58, %cst_24 [1] : vector<48x42xf32> to vector<48xf32>
    %60 = vector.shape_cast %59 : vector<48xf32> to vector<48x1xf32>
    %cst_25 = arith.constant 0.0238095243 : f32
    %61 = vector.broadcast %cst_25 : f32 to vector<48x1xf32>
    %62 = arith.mulf %60, %61 : vector<48x1xf32>
    %cst_26 = arith.constant 9.99999974E-6 : f32
    %63 = vector.broadcast %cst_26 : f32 to vector<48x1xf32>
    %64 = arith.addf %62, %63 : vector<48x1xf32>
    %65 = math.rsqrt %64 : vector<48x1xf32>
    %c0_27 = arith.constant 0 : index
    %c0_28 = arith.constant 0 : index
    %66 = vector.load %arg9[%c0_27, %c0_28] : memref<48x1xf32, #tpu.memory_space<vmem>>, vector<48x1xf32>
    %67 = arith.mulf %65, %66 : vector<48x1xf32>
    %68 = vector.broadcast %55 : vector<48x1xf32> to vector<48x42xf32>
    %69 = arith.subf %51, %68 : vector<48x42xf32>
    %70 = vector.broadcast %67 : vector<48x1xf32> to vector<48x42xf32>
    %71 = arith.mulf %69, %70 : vector<48x42xf32>
    %c0_29 = arith.constant 0 : index
    %c0_30 = arith.constant 0 : index
    %72 = vector.load %arg10[%c0_29, %c0_30] : memref<48x1xf32, #tpu.memory_space<vmem>>, vector<48x1xf32>
    %73 = vector.broadcast %72 : vector<48x1xf32> to vector<48x42xf32>
    %74 = arith.addf %71, %73 : vector<48x42xf32>
    %c0_31 = arith.constant 0 : index
    %c0_32 = arith.constant 0 : index
    %75 = vector.load %arg2[%c0_31, %c0_32] : memref<42x16xf32, #tpu.memory_space<vmem>>, vector<42x16xf32>
    %cst_33 = arith.constant dense<0.000000e+00> : vector<48x16xf32>
    %76 = tpu.matmul %74, %75, %cst_33 {dimension_numbers = #tpu.dot_dimension_numbers<[1], [0], [0], [1], [0, 0, 1, 1], [], []>} : vector<48x42xf32>, vector<42x16xf32>, vector<48x16xf32> -> vector<48x16xf32>
    %77 = vector.extract_strided_slice %76 {offsets = [0, 0], sizes = [48, 4], strides = [1, 1]} : vector<48x16xf32> to vector<48x4xf32>
    %78 = vector.extract_strided_slice %76 {offsets = [0, 2], sizes = [48, 4], strides = [1, 1]} : vector<48x16xf32> to vector<48x4xf32>
    %79 = vector.extract_strided_slice %76 {offsets = [0, 4], sizes = [48, 4], strides = [1, 1]} : vector<48x16xf32> to vector<48x4xf32>
    %80 = vector.extract_strided_slice %76 {offsets = [0, 6], sizes = [48, 4], strides = [1, 1]} : vector<48x16xf32> to vector<48x4xf32>
    %81 = vector.extract_strided_slice %76 {offsets = [0, 8], sizes = [48, 4], strides = [1, 1]} : vector<48x16xf32> to vector<48x4xf32>
    %82 = vector.extract_strided_slice %76 {offsets = [0, 10], sizes = [48, 4], strides = [1, 1]} : vector<48x16xf32> to vector<48x4xf32>
    %83 = vector.extract_strided_slice %76 {offsets = [0, 12], sizes = [48, 4], strides = [1, 1]} : vector<48x16xf32> to vector<48x4xf32>
    %84 = tpu.concatenate %77, %78, %79, %80, %81, %82, %83 in 0 : vector<48x4xf32>, vector<48x4xf32>, vector<48x4xf32>, vector<48x4xf32>, vector<48x4xf32>, vector<48x4xf32>, vector<48x4xf32> -> vector<336x4xf32>
    %c0_34 = arith.constant 0 : index
    %c0_35 = arith.constant 0 : index
    %85 = vector.load %arg11[%c0_34, %c0_35] : memref<72x336xf32, #tpu.memory_space<vmem>>, vector<72x336xf32>
    %cst_36 = arith.constant dense<0.000000e+00> : vector<72x4xf32>
    %86 = tpu.matmul %85, %84, %cst_36 {dimension_numbers = #tpu.dot_dimension_numbers<[1], [0], [0], [1], [0, 0, 1, 1], [], []>} : vector<72x336xf32>, vector<336x4xf32>, vector<72x4xf32> -> vector<72x4xf32>
    %c0_37 = arith.constant 0 : index
    %c0_38 = arith.constant 0 : index
    %87 = vector.load %arg12[%c0_37, %c0_38] : memref<72x1xf32, #tpu.memory_space<vmem>>, vector<72x1xf32>
    %88 = vector.broadcast %87 : vector<72x1xf32> to vector<72x4xf32>
    %89 = arith.addf %86, %88 : vector<72x4xf32>
    %90 = vector.extract_strided_slice %89 {offsets = [0, 0], sizes = [72, 2], strides = [1, 1]} : vector<72x4xf32> to vector<72x2xf32>
    %91 = vector.extract_strided_slice %89 {offsets = [0, 2], sizes = [72, 2], strides = [1, 1]} : vector<72x4xf32> to vector<72x2xf32>
    %92 = arith.addf %90, %91 : vector<72x2xf32>
    %cst_39 = arith.constant 5.000000e-01 : f32
    %93 = vector.broadcast %cst_39 : f32 to vector<72x2xf32>
    %94 = arith.mulf %93, %92 : vector<72x2xf32>
    %cst_40 = arith.constant 0.000000e+00 : f32
    %95 = vector.broadcast %cst_40 : f32 to vector<72x2xf32>
    %96 = arith.cmpf oge, %94, %95 : vector<72x2xf32>
    %cst_41 = arith.constant 0.00999999977 : f32
    %97 = vector.broadcast %cst_41 : f32 to vector<72x2xf32>
    %98 = arith.mulf %97, %94 : vector<72x2xf32>
    %99 = arith.select %96, %94, %98 : vector<72x2xi1>, vector<72x2xf32>
    %c0_42 = arith.constant 0 : index
    %c0_43 = arith.constant 0 : index
    %100 = vector.load %arg13[%c0_42, %c0_43] : memref<32x72xf32, #tpu.memory_space<vmem>>, vector<32x72xf32>
    %cst_44 = arith.constant dense<0.000000e+00> : vector<32x2xf32>
    %101 = tpu.matmul %100, %99, %cst_44 {dimension_numbers = #tpu.dot_dimension_numbers<[1], [0], [0], [1], [0, 0, 1, 1], [], []>} : vector<32x72xf32>, vector<72x2xf32>, vector<32x2xf32> -> vector<32x2xf32>
    %c0_45 = arith.constant 0 : index
    %c0_46 = arith.constant 0 : index
    %102 = vector.load %arg14[%c0_45, %c0_46] : memref<32x1xf32, #tpu.memory_space<vmem>>, vector<32x1xf32>
    %103 = vector.broadcast %102 : vector<32x1xf32> to vector<32x2xf32>
    %104 = arith.addf %101, %103 : vector<32x2xf32>
    %c0_47 = arith.constant 0 : index
    %c0_48 = arith.constant 0 : index
    %105 = vector.load %arg16[%c0_47, %c0_48] : memref<32x7xf32, #tpu.memory_space<vmem>>, vector<32x7xf32>
    %c0_49 = arith.constant 0 : index
    %c0_50 = arith.constant 0 : index
    %106 = vector.load %arg15[%c0_49, %c0_50] : memref<7x2xf32, #tpu.memory_space<vmem>>, vector<7x2xf32>
    %cst_51 = arith.constant dense<0.000000e+00> : vector<32x2xf32>
    %107 = tpu.matmul %105, %106, %cst_51 {dimension_numbers = #tpu.dot_dimension_numbers<[1], [0], [0], [1], [0, 0, 1, 1], [], []>} : vector<32x7xf32>, vector<7x2xf32>, vector<32x2xf32> -> vector<32x2xf32>
    %c0_52 = arith.constant 0 : index
    %c0_53 = arith.constant 0 : index
    %108 = vector.load %arg17[%c0_52, %c0_53] : memref<32x1xf32, #tpu.memory_space<vmem>>, vector<32x1xf32>
    %109 = vector.broadcast %108 : vector<32x1xf32> to vector<32x2xf32>
    %110 = arith.addf %107, %109 : vector<32x2xf32>
    %c0_54 = arith.constant 0 : index
    %c0_55 = arith.constant 0 : index
    %111 = vector.load %arg18[%c0_54, %c0_55] : memref<1x32xf32, #tpu.memory_space<vmem>>, vector<1x32xf32>
    %cst_56 = arith.constant 0.000000e+00 : f32
    %112 = vector.broadcast %cst_56 : f32 to vector<32x2xf32>
    %113 = arith.cmpf oge, %104, %112 : vector<32x2xf32>
    %cst_57 = arith.constant 0.00999999977 : f32
    %114 = vector.broadcast %cst_57 : f32 to vector<32x2xf32>
    %115 = arith.mulf %114, %104 : vector<32x2xf32>
    %116 = arith.select %113, %104, %115 : vector<32x2xi1>, vector<32x2xf32>
    %cst_58 = arith.constant dense<0.000000e+00> : vector<1x2xf32>
    %117 = tpu.matmul %111, %116, %cst_58 {dimension_numbers = #tpu.dot_dimension_numbers<[1], [0], [0], [1], [0, 0, 1, 1], [], []>} : vector<1x32xf32>, vector<32x2xf32>, vector<1x2xf32> -> vector<1x2xf32>
    %c0_59 = arith.constant 0 : index
    %c0_60 = arith.constant 0 : index
    %118 = vector.load %arg19[%c0_59, %c0_60] : memref<1x32xf32, #tpu.memory_space<vmem>>, vector<1x32xf32>
    %cst_61 = arith.constant 0.000000e+00 : f32
    %119 = vector.broadcast %cst_61 : f32 to vector<32x2xf32>
    %120 = arith.cmpf oge, %110, %119 : vector<32x2xf32>
    %cst_62 = arith.constant 0.00999999977 : f32
    %121 = vector.broadcast %cst_62 : f32 to vector<32x2xf32>
    %122 = arith.mulf %121, %110 : vector<32x2xf32>
    %123 = arith.select %120, %110, %122 : vector<32x2xi1>, vector<32x2xf32>
    %cst_63 = arith.constant dense<0.000000e+00> : vector<1x2xf32>
    %124 = tpu.matmul %118, %123, %cst_63 {dimension_numbers = #tpu.dot_dimension_numbers<[1], [0], [0], [1], [0, 0, 1, 1], [], []>} : vector<1x32xf32>, vector<32x2xf32>, vector<1x2xf32> -> vector<1x2xf32>
    %125 = arith.addf %117, %124 : vector<1x2xf32>
    %c0_64 = arith.constant 0 : index
    %c0_65 = arith.constant 0 : index
    %126 = vector.load %arg20[%c0_64, %c0_65] : memref<1x1xf32, #tpu.memory_space<vmem>>, vector<1x1xf32>
    %127 = vector.broadcast %126 : vector<1x1xf32> to vector<1x2xf32>
    %128 = arith.addf %125, %127 : vector<1x2xf32>
    %129 = arith.negf %128 : vector<1x2xf32>
    %130 = math.exp %129 : vector<1x2xf32>
    %cst_66 = arith.constant 1.000000e+00 : f32
    %131 = vector.broadcast %cst_66 : f32 to vector<1x2xf32>
    %132 = arith.addf %131, %130 : vector<1x2xf32>
    %133 = arith.divf %131, %132 : vector<1x2xf32>
    %c0_67 = arith.constant 0 : index
    %c0_68 = arith.constant 0 : index
    %134 = vector.load %arg21[%c0_67, %c0_68] : memref<1x2xf32, #tpu.memory_space<vmem>>, vector<1x2xf32>
    tpu.vector_store %arg21[%c0_67, %c0_68], %133 {strides = array<i32>} : memref<1x2xf32, #tpu.memory_space<vmem>>, vector<1x2xf32>,
    return
  }
}

</mosaic_0001>

<bundles_post_ra>
// kernel: conv_critic_forward.1
= control target key start
LH: loop header
LB: loop body
LE: loop exit
PB: predicated region body
PF: predicated region fallthrough
CT: control target
= control target key end

     0   :  { %s3171_s0 = inlined_call_operand.vmem [shape: f32[16,206], index: 0, kind: input, shape index: {}]   ;;  %s3172_s1 = inlined_call_operand.vmem [shape: f32[194,54], index: 1, kind: input, shape index: {}]   ;;  %s3173_s2 = inlined_call_operand.vmem [shape: f32[42,16], index: 2, kind: input, shape index: {}]   ;;  %s3174_s3 = inlined_call_operand.vmem [shape: f32[48,112], index: 3, kind: input, shape index: {}]   ;;  %s3175_s4 = inlined_call_operand.vmem [shape: f32[48,1], index: 4, kind: input, shape index: {}]   ;;  %s3176_s5 = inlined_call_operand.vmem [shape: f32[48,1], index: 5, kind: input, shape index: {}]   ;;  %s3177_s6 = inlined_call_operand.vmem [shape: f32[48,1], index: 6, kind: input, shape index: {}]   ;;  %s3178_s7 = inlined_call_operand.vmem [shape: f32[48,336], index: 7, kind: input, shape index: {}]   ;;  %s3179_s8 = inlined_call_operand.vmem [shape: f32[48,1], index: 8, kind: input, shape index: {}]   ;;  %s3180_s9 = inlined_call_operand.vmem [shape: f32[48,1], index: 9, kind: input, shape index: {}]   ;;  %s3181_s10 = inlined_call_operand.vmem [shape: f32[48,1], index: 10, kind: input, shape index: {}]   ;;  %s3182_s11 = inlined_call_operand.vmem [shape: f32[72,336], index: 11, kind: input, shape index: {}]   ;;  %s3183_s12 = inlined_call_operand.vmem [shape: f32[72,1], index: 12, kind: input, shape index: {}]   ;;  %s3184_s13 = inlined_call_operand.vmem [shape: f32[32,72], index: 13, kind: input, shape index: {}]   ;;  %s3185_s14 = inlined_call_operand.vmem [shape: f32[32,1], index: 14, kind: input, shape index: {}]   ;;  %s3186_s15 = inlined_call_operand.vmem [shape: f32[7,2], index: 15, kind: input, shape index: {}]   ;;  %s3187_s16 = inlined_call_operand.vmem [shape: f32[32,7], index: 16, kind: input, shape index: {}]   ;;  %s3188_s17 = inlined_call_operand.vmem [shape: f32[32,1], index: 17, kind: input, shape index: {}]   ;;  %s3189_s18 = inlined_call_operand.vmem [shape: f32[1,32], index: 18, kind: input, shape index: {}]   ;;  %s3190_s19 = inlined_call_operand.vmem [shape: f32[1,32], index: 19, kind: input, shape index: {}]   ;;  %s3191_s20 = inlined_call_operand.<no memory space> [shape: f32[1,1], index: 20, kind: input, shape index: {}]   ;;  %s3192_s21 = inlined_call_operand.hbm [shape: f32[1,2], index: 21, kind: output, shape index: {}]  }
   0x1   :  { %3201 = sst [smem:[#allocation6_spill]] %s3171_s0  ;;  %v26_v0 = vstv %s3191_s20 }
   0x2   :  { %3202 = sst [smem:[#allocation7_spill]] %s3172_s1  ;;  %27 = vst [vmem:[#allocation2] sm:$0x1] %v26_v0 }
   0x3   :  { %3203 = sst [smem:[#allocation8_spill]] %s3173_s2 }
   0x4   :  { %3204 = sst [smem:[#allocation9_spill]] %s3174_s3 }
   0x5   :  { %3205 = sst [smem:[#allocation10_spill]] %s3175_s4 }
   0x6   :  { %3206 = sst [smem:[#allocation11_spill]] %s3176_s5 }
   0x7   :  { %s3207_s3 = sld [smem:[#allocation6_spill]] }
   0xd   :  { %v2421_v1 = vld [vmem:[%s3207_s3 + $0x10] sm:$0xff]  ;;  %v2426_v2 = vld [vmem:[%s3207_s3 + $0x18] sm:$0xff] }
   0xe   :  { %v2000_v3 = vpack.i.bf16 %v2426_v2, %v2421_v1 }
   0xf   :  { %28 = vsyncpa [#allocation4], 0  ;;  %s3199_s0 = smov 116   ;;  %s2298_s4 = smov 118   ;;  %v2435_v4 = vld [vmem:[%s3207_s3] sm:$0xff]  ;;  %v2440_v5 = vld [vmem:[%s3207_s3 + $0x8] sm:$0xff] }
  0x10   :  { %2001 = vrot.lane.b32.xlu0 %v2000_v3, %s3199_s0  ;;  %2011 = vrot.lane.b32.xlu1 %v2000_v3, %s2298_s4  ;;  %s2299_s23 = smov 120   ;;  %v2005_v6 = vpack.i.bf16 %v2440_v5, %v2435_v4  ;;  %s2300_s1 = smov 122   ;;  %vm162_vm0 = vcmask 949248   ;;  %v2303_v15 = vmov 0   ;;  %vm147_vm1 = vcmask 965632  }
  0x11   :  { %2021 = vrot.lane.b32.xlu2 %v2000_v3, %s2299_s23  ;;  %s2301_s24 = smov 124   ;;  %s2302_s2 = smov 126   ;;  %2060 = vset.pattern.permute.xlu0 %v2303_v15  ;;  %vm132_vm2 = vcmask 982016   ;;  %vm117_vm3 = vcmask 998400   ;;  %vm102_vm4 = vcmask 1014784   ;;  %vm87_vm5 = vcmask 1031168  }
  0x12   :  { %s3208_s27 = sld [smem:[#allocation10_spill]]  ;;  %2061 = vset.pattern.permute.xlu1 %v2303_v15  ;;  %2062 = vset.pattern.permute.xlu2 %v2303_v15  ;;  %vm211_vm6 = vcmask 916480   ;;  %vm300_vm7 = vcmask 539648  }
  0x13   :  { %s3209_s22 = sld [smem:[#allocation9_spill]] }
  0x14   :  { %s3210_s3 = sld [smem:[#allocation11_spill]] }
  0x15   :  { %s3211_s5 = sld [smem:[#allocation7_spill]] }
  0x16   :  { %s3213_s30 = sld [smem:[#allocation8_spill]] }
  0x18   :  { %2006 = vrot.lane.b32.xlu0 %v2005_v6, %s3199_s0  ;;  %2016 = vrot.lane.b32.xlu1 %v2005_v6, %s2298_s4  ;;  %v175_v14 = vld [vmem:[%s3208_s27] sm:$0xff]  ;;  %v180_v29 = vld [vmem:[%s3208_s27 + $0x28] sm:$0xff] }
  0x19   :  { %2026 = vrot.lane.b32.xlu2 %v2005_v6, %s2299_s23  ;;  %v176_v45 = vld [vmem:[%s3208_s27 + $0x8] sm:$0xff]  ;;  %v169_v59 = vld [vmem:[%s3209_s22] sm:$0xff]  ;;  %v178_v60 = vld [vmem:[%s3208_s27 + $0x18] sm:$0xff] }
  0x1a   :  { %v170_v61 = vld [vmem:[%s3209_s22 + $0x8] sm:$0xff]  ;;  %v177_v62 = vld [vmem:[%s3208_s27 + $0x10] sm:$0xff]  ;;  %v179_v0 = vld [vmem:[%s3208_s27 + $0x20] sm:$0xff]  ;;  %s1930_s27 = sshll.u32 %s3192_s21, 4  ;;  %s1931_s27 = int_to_ptr.hbm [resolvable:$true] %s1930_s27 }
  0x1b   :  { %v171_v63 = vld [vmem:[%s3209_s22 + $0x10] sm:$0xff] }
  0x20   :  { %2031 = vrot.lane.b32.xlu0 %v2000_v3, %s2300_s1  ;;  %2036 = vrot.lane.b32.xlu1 %v2005_v6, %s2300_s1 }
  0x21   :  { %2041 = vrot.lane.b32.xlu2 %v2000_v3, %s2301_s24 }
  0x28   :  { %2046 = vrot.lane.b32.xlu0 %v2005_v6, %s2301_s24  ;;  %2051 = vrot.lane.b32.xlu1 %v2000_v3, %s2302_s2  ;;  %v174_v3 = vld [vmem:[%s3209_s22 + $0x28] sm:$0xff] }
  0x29   :  { %2056 = vrot.lane.b32.xlu2 %v2005_v6, %s2302_s2 }
  0x30   :  { %183 = vperm.xlu0 %2060, %v175_v14   ;;  %188 = vperm.xlu1 %2061, %v176_v45  }
  0x31   :  { %193 = vperm.xlu2 %2062, %v177_v62  }
  0x38   :  { %208 = vperm.xlu0 %2060, %v180_v29   ;;  %198 = vperm.xlu1 %2061, %v178_v60  }
  0x39   :  { %203 = vperm.xlu2 %2062, %v179_v0  }
  0x6b   :  { %v2022_v7 = vpop.permute.xlu2 %2021 }
  0x6c   :  { %v2023_v26 = vunpack.i.l.bf16 %v2022_v7  ;;  %v2024_v28 = vunpack.i.h.bf16 %v2022_v7 }
  0x6e   :  { %v134_v36 = vsel %vm132_vm2, %v2023_v26, %v2024_v28 }
  0x73   :  { %v2027_v12 = vpop.permute.xlu2 %2026 }
  0x74   :  { %v2028_v30 = vunpack.i.l.bf16 %v2027_v12  ;;  %v2029_v32 = vunpack.i.h.bf16 %v2027_v12 }
  0x76   :  { %v133_v39 = vsel %vm132_vm2, %v2028_v30, %v2029_v32 }
  0x7b   :  { %v2042_v25 = vpop.permute.xlu2 %2041 }
  0x7c   :  { %v2043_v41 = vunpack.i.l.bf16 %v2042_v25  ;;  %v2044_v42 = vunpack.i.h.bf16 %v2042_v25 }
  0x7e   :  { %v104_v49 = vsel %vm102_vm4, %v2043_v41, %v2044_v42 }
  0x82   :  { %v2002_v8 = vpop.permute.xlu0 %2001  ;;  %v2012_v9 = vpop.permute.xlu1 %2011 }
  0x83   :  { %v2003_v10 = vunpack.i.l.bf16 %v2002_v8  ;;  %v2004_v11 = vunpack.i.h.bf16 %v2002_v8  ;;  %v2013_v18 = vunpack.i.l.bf16 %v2012_v9  ;;  %v2014_v21 = vunpack.i.h.bf16 %v2012_v9  ;;  %v2057_v44 = vpop.permute.xlu2 %2056 }
  0x84   :  { %v2058_v50 = vunpack.i.l.bf16 %v2057_v44  ;;  %v2059_v51 = vunpack.i.h.bf16 %v2057_v44 }
  0x85   :  { %267 = vmatpush.msra.mxu1 %v2004_v11  ;;  %v164_v13 = vsel %vm162_vm0, %v2003_v10, %v2004_v11  ;;  %v149_v27 = vsel %vm147_vm1, %v2013_v18, %v2014_v21 }
  0x86   :  { %232 = vmatpush.msra.mxu0 %v164_v13  ;;  %v88_v58 = vsel %vm87_vm5, %v2058_v50, %v2059_v51 }
  0x8a   :  { %v2007_v16 = vpop.permute.xlu0 %2006  ;;  %v2017_v17 = vpop.permute.xlu1 %2016 }
  0x8b   :  { %v2008_v19 = vunpack.i.l.bf16 %v2007_v16  ;;  %v2009_v20 = vunpack.i.h.bf16 %v2007_v16  ;;  %v2018_v22 = vunpack.i.l.bf16 %v2017_v17  ;;  %v2019_v24 = vunpack.i.h.bf16 %v2017_v17  ;;  %v194_v18 = vpop.permute.xlu2 %193 }
  0x8d   :  { %268 = vmatpush.msra.mxu1 %v2009_v20  ;;  %v163_v23 = vsel %vm162_vm0, %v2008_v19, %v2009_v20  ;;  %v148_v31 = vsel %vm147_vm1, %v2018_v22, %v2019_v24 }
  0x8e   :  { %233 = vmatpush.msra.mxu0 %v163_v23 }
  0x8f   :  { %269 = vmatpush.msra.mxu1 %v2014_v21 }
  0x90   :  { %234 = vmatpush.msra.mxu0 %v149_v27 }
  0x91   :  { %270 = vmatpush.msra.mxu1 %v2019_v24 }
  0x92   :  { %v2032_v33 = vpop.permute.xlu0 %2031  ;;  %235 = vmatpush.msra.mxu0 %v148_v31  ;;  %v2037_v34 = vpop.permute.xlu1 %2036 }
  0x93   :  { %v2033_v35 = vunpack.i.l.bf16 %v2032_v33  ;;  %271 = vmatpush.msra.mxu1 %v2024_v28  ;;  %v2034_v37 = vunpack.i.h.bf16 %v2032_v33  ;;  %v2038_v38 = vunpack.i.l.bf16 %v2037_v34  ;;  %v2039_v40 = vunpack.i.h.bf16 %v2037_v34 }
  0x94   :  { %236 = vmatpush.msra.mxu0 %v134_v36 }
  0x95   :  { %272 = vmatpush.msra.mxu1 %v2029_v32  ;;  %v119_v43 = vsel %vm117_vm3, %v2033_v35, %v2034_v37  ;;  %v118_v46 = vsel %vm117_vm3, %v2038_v38, %v2039_v40  ;;  %v204_v32 = vpop.permute.xlu2 %203 }
  0x96   :  { %237 = vmatpush.msra.mxu0 %v133_v39 }
  0x97   :  { %273 = vmatpush.msra.mxu1 %v2034_v37 }
  0x98   :  { %238 = vmatpush.msra.mxu0 %v119_v43 }
  0x99   :  { %274 = vmatpush.msra.mxu1 %v2039_v40 }
  0x9a   :  { %v2047_v47 = vpop.permute.xlu0 %2046  ;;  %239 = vmatpush.msra.mxu0 %v118_v46  ;;  %v2052_v48 = vpop.permute.xlu1 %2051 }
  0x9b   :  { %v2048_v52 = vunpack.i.l.bf16 %v2047_v47  ;;  %275 = vmatpush.msra.mxu1 %v2044_v42  ;;  %v2053_v53 = vunpack.i.l.bf16 %v2052_v48  ;;  %v2049_v54 = vunpack.i.h.bf16 %v2047_v47  ;;  %v2054_v55 = vunpack.i.h.bf16 %v2052_v48 }
  0x9c   :  { %240 = vmatpush.msra.mxu0 %v104_v49 }
  0x9d   :  { %276 = vmatpush.msra.mxu1 %v2049_v54  ;;  %v103_v56 = vsel %vm102_vm4, %v2048_v52, %v2049_v54  ;;  %v89_v57 = vsel %vm87_vm5, %v2053_v53, %v2054_v55 }
  0x9e   :  { %241 = vmatpush.msra.mxu0 %v103_v56 }
  0x9f   :  { %277 = vmatpush.msra.mxu1 %v2054_v55 }
  0xa0   :  { %242 = vmatpush.msra.mxu0 %v89_v57 }
  0xa1   :  { %278 = vmatpush.msra.mxu1 %v2059_v51 }
  0xa2   :  { %243 = vmatpush.msra.mxu0 %v88_v58  ;;  %v189_v11 = vpop.permute.xlu1 %188 }
  0xa3   :  { %279 = vmatpush.msra.mxu1 %v2426_v2  ;;  %v173_v2 = vld [vmem:[%s3209_s22 + $0x20] sm:$0xff] }
  0xa4   :  { %244 = vmatpush.msra.mxu0 %v2421_v1  ;;  %v172_v1 = vld [vmem:[%s3209_s22 + $0x18] sm:$0xff] }
  0xa5   :  { %280 = vmatpush.msra.mxu1 %v2440_v5 }
  0xa6   :  { %245 = vmatpush.msra.mxu0 %v2435_v4  ;;  %1945 = vmatmul.msk.f32.vlgmr.msra.gmra.mxu1 %vm211_vm6, %v169_v59  ;;  %v184_v4 = vpop.permute.xlu0 %183 }
  0xa7   :  { %1939 = vmatmul.msk.f32.vlgmr.msra.gmra.mxu0 %vm211_vm6, %v169_v59 }
  0xaa   :  { %v199_v25 = vpop.permute.xlu1 %198 }
  0xae   :  { %1946 = vmatmul.msk.f32.gmra.mxu1 %vm211_vm6, %v170_v61  ;;  %v209_v39 = vpop.permute.xlu0 %208 }
  0xaf   :  { %1940 = vmatmul.msk.f32.gmra.mxu0 %vm211_vm6, %v170_v61 }
  0xb6   :  { %1947 = vmatmul.msk.f32.gmra.mxu1 %vm211_vm6, %v171_v63 }
  0xb7   :  { %1941 = vmatmul.msk.f32.gmra.mxu0 %vm211_vm6, %v171_v63 }
  0xbe   :  { %1948 = vmatmul.msk.f32.gmra.mxu1 %vm211_vm6, %v172_v1 }
  0xbf   :  { %1942 = vmatmul.msk.f32.gmra.mxu0 %vm211_vm6, %v172_v1 }
  0xc6   :  { %1949 = vmatmul.msk.f32.gmra.mxu1 %vm211_vm6, %v173_v2 }
  0xc7   :  { %1943 = vmatmul.msk.f32.gmra.mxu0 %vm211_vm6, %v173_v2 }
  0xce   :  { %1950 = vmatmul.msk.f32.gmra.mxu1 %vm211_vm6, %v174_v3 }
  0xcf   :  { %1944 = vmatmul.msk.f32.gmra.mxu0 %vm211_vm6, %v174_v3 }
 0x123   :  { %v282_v5 = vpop.f32.mrf.mxu1 }
 0x124   :  { %v283_v6 = vadd.f32 %v282_v5, %v184_v4  ;;  %v247_v7 = vpop.f32.mrf.mxu0 }
 0x125   :  { %v248_v8 = vadd.f32 %v247_v7, %v184_v4 }
 0x126   :  { %v301_v9 = vsel %vm300_vm7, %v283_v6, 0.0 }
 0x127   :  { %v302_v10 = vadd.f32 %v301_v9, %v248_v8 }
 0x129   :  { %303 = vadd.xlane.f32.xlu1 %v302_v10 }
 0x12b   :  { %v285_v12 = vpop.f32.mrf.mxu1 }
 0x12c   :  { %v286_v13 = vadd.f32 %v285_v12, %v189_v11  ;;  %v250_v14 = vpop.f32.mrf.mxu0 }
 0x12d   :  { %v251_v15 = vadd.f32 %v250_v14, %v189_v11 }
 0x12e   :  { %v305_v16 = vsel %vm300_vm7, %v286_v13, 0.0 }
 0x12f   :  { %v306_v17 = vadd.f32 %v305_v16, %v251_v15 }
 0x131   :  { %307 = vadd.xlane.f32.xlu2 %v306_v17 }
 0x133   :  { %v288_v19 = vpop.f32.mrf.mxu1 }
 0x134   :  { %v289_v20 = vadd.f32 %v288_v19, %v194_v18  ;;  %v253_v21 = vpop.f32.mrf.mxu0 }
 0x135   :  { %v254_v22 = vadd.f32 %v253_v21, %v194_v18 }
 0x136   :  { %v309_v23 = vsel %vm300_vm7, %v289_v20, 0.0 }
 0x137   :  { %v310_v24 = vadd.f32 %v309_v23, %v254_v22 }
 0x139   :  { %311 = vadd.xlane.f32.xlu0 %v310_v24 }
 0x13b   :  { %v291_v26 = vpop.f32.mrf.mxu1 }
 0x13c   :  { %v292_v27 = vadd.f32 %v291_v26, %v199_v25  ;;  %v256_v28 = vpop.f32.mrf.mxu0 }
 0x13d   :  { %v257_v29 = vadd.f32 %v256_v28, %v199_v25 }
 0x13e   :  { %v313_v30 = vsel %vm300_vm7, %v292_v27, 0.0 }
 0x13f   :  { %v314_v31 = vadd.f32 %v313_v30, %v257_v29  ;;  %v505_v30 = vld [vmem:[%s3177_s6] sm:$0xff] }
 0x141   :  { %315 = vadd.xlane.f32.xlu2 %v314_v31 }
 0x143   :  { %v294_v33 = vpop.f32.mrf.mxu1 }
 0x144   :  { %v295_v34 = vadd.f32 %v294_v33, %v204_v32  ;;  %v259_v35 = vpop.f32.mrf.mxu0 }
 0x145   :  { %v260_v36 = vadd.f32 %v259_v35, %v204_v32 }
 0x146   :  { %v317_v37 = vsel %vm300_vm7, %v295_v34, 0.0 }
 0x147   :  { %v318_v38 = vadd.f32 %v317_v37, %v260_v36 }
 0x149   :  { %319 = vadd.xlane.f32.xlu1 %v318_v38 }
 0x14b   :  { %v297_v40 = vpop.f32.mrf.mxu1 }
 0x14c   :  { %v298_v41 = vadd.f32 %v297_v40, %v209_v39  ;;  %v262_v42 = vpop.f32.mrf.mxu0 }
 0x14d   :  { %v263_v43 = vadd.f32 %v262_v42, %v209_v39 }
 0x14e   :  { %v321_v44 = vsel %vm300_vm7, %v298_v41, 0.0 }
 0x14f   :  { %v322_v45 = vadd.f32 %v321_v44, %v263_v43 }
 0x151   :  { %323 = vadd.xlane.f32.xlu2 %v322_v45 }
 0x19c   :  { %v304_v46 = vpop.xlane.xlu1 %303 }
 0x19d   :  { %v325_v47 = vmul.f32 0.005154639, %v304_v46 }
 0x19f   :  { %v2522_v48 = vsub.f32 %v248_v8, %v325_v47  ;;  %v2524_v49 = vsub.f32 %v283_v6, %v325_v47 }
 0x1a1   :  { %v343_v50 = vmul.f32 %v2522_v48, %v2522_v48  ;;  %v344_v51 = vmul.f32 %v2524_v49, %v2524_v49 }
 0x1a3   :  { %v355_v52 = vsel %vm300_vm7, %v344_v51, 0.0 }
 0x1a4   :  { %v308_v53 = vpop.xlane.xlu2 %307  ;;  %v356_v54 = vadd.f32 %v355_v52, %v343_v50  ;;  %v451_v50 = vld [vmem:[%s3210_s3] sm:$0xff] }
 0x1a5   :  { %v326_v55 = vmul.f32 0.005154639, %v308_v53 }
 0x1a6   :  { %357 = vadd.xlane.f32.xlu0 %v356_v54 }
 0x1a7   :  { %v2531_v56 = vsub.f32 %v251_v15, %v326_v55  ;;  %v2533_v57 = vsub.f32 %v286_v13, %v326_v55 }
 0x1a9   :  { %v345_v58 = vmul.f32 %v2531_v56, %v2531_v56  ;;  %v346_v59 = vmul.f32 %v2533_v57, %v2533_v57 }
 0x1ab   :  { %v359_v60 = vsel %vm300_vm7, %v346_v59, 0.0 }
 0x1ac   :  { %v312_v61 = vpop.xlane.xlu0 %311  ;;  %v360_v62 = vadd.f32 %v359_v60, %v345_v58 }
 0x1ad   :  { %v327_v63 = vmul.f32 0.005154639, %v312_v61 }
 0x1ae   :  { %361 = vadd.xlane.f32.xlu1 %v360_v62 }
 0x1af   :  { %v2540_v0 = vsub.f32 %v254_v22, %v327_v63  ;;  %v2542_v1 = vsub.f32 %v289_v20, %v327_v63 }
 0x1b1   :  { %v347_v2 = vmul.f32 %v2540_v0, %v2540_v0  ;;  %v348_v3 = vmul.f32 %v2542_v1, %v2542_v1 }
 0x1b3   :  { %v363_v4 = vsel %vm300_vm7, %v348_v3, 0.0 }
 0x1b4   :  { %v316_v5 = vpop.xlane.xlu2 %315  ;;  %v364_v6 = vadd.f32 %v363_v4, %v347_v2  ;;  %v452_v2 = vld [vmem:[%s3210_s3 + $0x8] sm:$0xff] }
 0x1b5   :  { %v328_v7 = vmul.f32 0.005154639, %v316_v5  ;;  %v506_v4 = vld [vmem:[%s3177_s6 + $0x8] sm:$0xff] }
 0x1b6   :  { %365 = vadd.xlane.f32.xlu2 %v364_v6 }
 0x1b7   :  { %v2549_v8 = vsub.f32 %v257_v29, %v328_v7  ;;  %v2551_v9 = vsub.f32 %v292_v27, %v328_v7 }
 0x1b9   :  { %v349_v10 = vmul.f32 %v2549_v8, %v2549_v8  ;;  %v350_v11 = vmul.f32 %v2551_v9, %v2551_v9 }
 0x1bb   :  { %v367_v12 = vsel %vm300_vm7, %v350_v11, 0.0 }
 0x1bc   :  { %v320_v13 = vpop.xlane.xlu1 %319  ;;  %v368_v14 = vadd.f32 %v367_v12, %v349_v10  ;;  %v568_v12 = vld [vmem:[%s3211_s5 + $0x78] sm:$0xff] }
 0x1bd   :  { %v329_v15 = vmul.f32 0.005154639, %v320_v13  ;;  %v567_v13 = vld [vmem:[%s3211_s5 + $0x70] sm:$0xff]  ;;  %600 = vmatpush.msra.mxu2 %v568_v12 }
 0x1be   :  { %369 = vadd.xlane.f32.xlu0 %v368_v14  ;;  %v559_v12 = vld [vmem:[%s3211_s5 + $0x30] sm:$0xff] }
 0x1bf   :  { %v2558_v16 = vsub.f32 %v260_v36, %v329_v15  ;;  %v2560_v17 = vsub.f32 %v295_v34, %v329_v15  ;;  %601 = vmatpush.msra.mxu2 %v567_v13  ;;  %v574_v13 = vld [vmem:[%s3211_s5 + $0xa8] sm:$0xff] }
 0x1c1   :  { %v351_v18 = vmul.f32 %v2558_v16, %v2558_v16  ;;  %v352_v19 = vmul.f32 %v2560_v17, %v2560_v17 }
 0x1c3   :  { %v371_v20 = vsel %vm300_vm7, %v352_v19, 0.0  ;;  %v566_v19 = vld [vmem:[%s3211_s5 + $0x68] sm:$0xff] }
 0x1c4   :  { %v324_v21 = vpop.xlane.xlu2 %323  ;;  %v372_v22 = vadd.f32 %v371_v20, %v351_v18  ;;  %602 = vmatpush.msra.mxu2 %v566_v19  ;;  %v572_v19 = vld [vmem:[%s3211_s5 + $0x98] sm:$0xff] }
 0x1c5   :  { %v330_v23 = vmul.f32 0.005154639, %v324_v21 }
 0x1c6   :  { %373 = vadd.xlane.f32.xlu1 %v372_v22  ;;  %v453_v22 = vld [vmem:[%s3210_s3 + $0x10] sm:$0xff] }
 0x1c7   :  { %v2567_v24 = vsub.f32 %v263_v43, %v330_v23  ;;  %v2569_v25 = vsub.f32 %v298_v41, %v330_v23  ;;  %v565_v23 = vld [vmem:[%s3211_s5 + $0x60] sm:$0xff] }
 0x1c8   :  { %603 = vmatpush.msra.mxu2 %v565_v23  ;;  %v554_v23 = vld [vmem:[%s3211_s5 + $0x8] sm:$0xff] }
 0x1c9   :  { %v353_v26 = vmul.f32 %v2567_v24, %v2567_v24  ;;  %v354_v27 = vmul.f32 %v2569_v25, %v2569_v25 }
 0x1cb   :  { %v375_v28 = vsel %vm300_vm7, %v354_v27, 0.0  ;;  %v507_v27 = vld [vmem:[%s3177_s6 + $0x10] sm:$0xff] }
 0x1cc   :  { %v376_v29 = vadd.f32 %v375_v28, %v353_v26 }
 0x1ce   :  { %377 = vadd.xlane.f32.xlu2 %v376_v29 }
 0x1df   :  { %513 = vperm.xlu1 %2061, %v505_v30   ;;  %v564_v30 = vld [vmem:[%s3211_s5 + $0x58] sm:$0xff] }
 0x1e0   :  { %604 = vmatpush.msra.mxu2 %v564_v30 }
 0x219   :  { %v358_v31 = vpop.xlane.xlu0 %357 }
 0x21a   :  { %v379_v32 = vmul.f32 0.005154639, %v358_v31 }
 0x21c   :  { %v385_v33 = vadd.f32 1e-05, %v379_v32 }
 0x21e   :  { %2243 = vrsqrt.f32 %v385_v33  ;;  %vm397_vm9 = vweird.f32 %v385_v33 }
 0x221   :  { %v362_v34 = vpop.xlane.xlu1 %361 }
 0x222   :  { %v380_v35 = vmul.f32 0.005154639, %v362_v34  ;;  %v563_v34 = vld [vmem:[%s3211_s5 + $0x50] sm:$0xff] }
 0x223   :  { %605 = vmatpush.msra.mxu2 %v563_v34 }
 0x224   :  { %v2244_v36 = vpop.eup %2243  ;;  %v386_v37 = vadd.f32 1e-05, %v380_v35 }
 0x225   :  { %v392_v38 = vmul.f32 %v2244_v36, %v385_v33  ;;  %vm398_vm8 = vweird.f32 %v2244_v36 }
 0x226   :  { %2245 = vrsqrt.f32 %v386_v37  ;;  %vm399_vm10 = vmor %vm397_vm9, %vm398_vm8  ;;  %vm407_vm12 = vweird.f32 %v386_v37 }
 0x227   :  { %v393_v39 = vmul.f32 %v2244_v36, %v392_v38 }
 0x229   :  { %v394_v40 = vmul.f32 0.5, %v393_v39  ;;  %v366_v41 = vpop.xlane.xlu2 %365 }
 0x22a   :  { %v381_v42 = vmul.f32 0.005154639, %v366_v41 }
 0x22b   :  { %v395_v43 = vsub.f32 1.5, %v394_v40  ;;  %v454_v40 = vld [vmem:[%s3210_s3 + $0x18] sm:$0xff] }
 0x22c   :  { %v2246_v44 = vpop.eup %2245  ;;  %v387_v45 = vadd.f32 1e-05, %v381_v42  ;;  %v508_v42 = vld [vmem:[%s3177_s6 + $0x18] sm:$0xff] }
 0x22d   :  { %v402_v46 = vmul.f32 %v2246_v44, %v386_v37  ;;  %v396_v47 = vmul.f32 %v2244_v36, %v395_v43  ;;  %vm408_vm11 = vweird.f32 %v2246_v44 }
 0x22e   :  { %2247 = vrsqrt.f32 %v387_v45  ;;  %vm409_vm13 = vmor %vm407_vm12, %vm408_vm11  ;;  %vm417_vm15 = vweird.f32 %v387_v45  ;;  %vm596_vm11 = vcmask 1041408   ;;  %vm962_vm12 = vcmask 343040  }
 0x22f   :  { %v403_v51 = vmul.f32 %v2246_v44, %v402_v46  ;;  %v400_v52 = vsel %vm399_vm10, %v2244_v36, %v396_v47 }
 0x230   :  { %v457_v53 = vmul.f32 %v451_v50, %v400_v52  ;;  %v455_v52 = vld [vmem:[%s3210_s3 + $0x20] sm:$0xff] }
 0x231   :  { %v404_v54 = vmul.f32 0.5, %v403_v51  ;;  %v370_v55 = vpop.xlane.xlu0 %369 }
 0x232   :  { %v382_v58 = vmul.f32 0.005154639, %v370_v55  ;;  %465 = vperm.xlu0 %2060, %v457_v53  }
 0x233   :  { %v405_v59 = vsub.f32 1.5, %v404_v54  ;;  %v509_v54 = vld [vmem:[%s3177_s6 + $0x20] sm:$0xff] }
 0x234   :  { %v2248_v60 = vpop.eup %2247  ;;  %v388_v61 = vadd.f32 1e-05, %v382_v58 }
 0x235   :  { %v412_v62 = vmul.f32 %v2248_v60, %v387_v45  ;;  %v406_v63 = vmul.f32 %v2246_v44, %v405_v59  ;;  %vm418_vm14 = vweird.f32 %v2248_v60 }
 0x236   :  { %2249 = vrsqrt.f32 %v388_v61  ;;  %vm419_vm0 = vmor %vm417_vm15, %vm418_vm14  ;;  %vm427_vm2 = vweird.f32 %v388_v61 }
 0x237   :  { %v413_v3 = vmul.f32 %v2248_v60, %v412_v62  ;;  %v410_v5 = vsel %vm409_vm13, %v2246_v44, %v406_v63  ;;  %v456_v62 = vld [vmem:[%s3210_s3 + $0x28] sm:$0xff] }
 0x238   :  { %v458_v6 = vmul.f32 %v452_v2, %v410_v5  ;;  %v510_v2 = vld [vmem:[%s3177_s6 + $0x28] sm:$0xff]  ;;  %v561_v5 = vld [vmem:[%s3211_s5 + $0x40] sm:$0xff] }
 0x239   :  { %v414_v7 = vmul.f32 0.5, %v413_v3  ;;  %v374_v10 = vpop.xlane.xlu1 %373 }
 0x23a   :  { %v383_v11 = vmul.f32 0.005154639, %v374_v10  ;;  %518 = vperm.xlu0 %2060, %v506_v4   ;;  %470 = vperm.xlu2 %2062, %v458_v6   ;;  %v562_v4 = vld [vmem:[%s3211_s5 + $0x48] sm:$0xff]  ;;  %v577_v6 = vld [vmem:[%s3211_s5 + $0xc0] sm:$0x3]  ;;  %v560_v10 = vld [vmem:[%s3211_s5 + $0x38] sm:$0xff] }
 0x23b   :  { %v415_v14 = vsub.f32 1.5, %v414_v7  ;;  %606 = vmatpush.msra.mxu2 %v562_v4  ;;  %1951 = vmatpush.msk.msra.mxu3 %vm596_vm11, %v577_v6  ;;  %v576_v7 = vld [vmem:[%s3211_s5 + $0xb8] sm:$0xff] }
 0x23c   :  { %v2250_v15 = vpop.eup %2249  ;;  %v389_v18 = vadd.f32 1e-05, %v383_v11  ;;  %v575_v11 = vld [vmem:[%s3211_s5 + $0xb0] sm:$0xff] }
 0x23d   :  { %v422_v20 = vmul.f32 %v2250_v15, %v388_v61  ;;  %v416_v21 = vmul.f32 %v2248_v60, %v415_v14  ;;  %vm428_vm1 = vweird.f32 %v2250_v15  ;;  %607 = vmatpush.msra.mxu2 %v561_v5  ;;  %643 = vmatpush.msra.mxu3 %v576_v7  ;;  %v558_v14 = vld [vmem:[%s3211_s5 + $0x28] sm:$0xff] }
 0x23e   :  { %2251 = vrsqrt.f32 %v389_v18  ;;  %vm429_vm3 = vmor %vm427_vm2, %vm428_vm1  ;;  %vm437_vm5 = vweird.f32 %v389_v18 }
 0x23f   :  { %v423_v26 = vmul.f32 %v2250_v15, %v422_v20  ;;  %v420_v28 = vsel %vm419_vm0, %v2248_v60, %v416_v21  ;;  %608 = vmatpush.msra.mxu2 %v560_v10  ;;  %644 = vmatpush.msra.mxu3 %v575_v11  ;;  %v556_v20 = vld [vmem:[%s3211_s5 + $0x18] sm:$0xff]  ;;  %v571_v21 = vld [vmem:[%s3211_s5 + $0x90] sm:$0xff] }
 0x240   :  { %v459_v29 = vmul.f32 %v453_v22, %v420_v28  ;;  %v555_v22 = vld [vmem:[%s3211_s5 + $0x10] sm:$0xff]  ;;  %v569_v28 = vld [vmem:[%s3211_s5 + $0x80] sm:$0xff] }
 0x241   :  { %v424_v31 = vmul.f32 0.5, %v423_v26  ;;  %v378_v32 = vpop.xlane.xlu2 %377  ;;  %609 = vmatpush.msra.mxu2 %v559_v12  ;;  %645 = vmatpush.msra.mxu3 %v574_v13  ;;  %v570_v26 = vld [vmem:[%s3211_s5 + $0x88] sm:$0xff] }
 0x242   :  { %v384_v33 = vmul.f32 0.005154639, %v378_v32  ;;  %523 = vperm.xlu0 %2060, %v507_v27   ;;  %475 = vperm.xlu1 %2061, %v459_v29   ;;  %v553_v27 = vld [vmem:[%s3211_s5] sm:$0xff] }
 0x243   :  { %v425_v35 = vsub.f32 1.5, %v424_v31  ;;  %610 = vmatpush.msra.mxu2 %v558_v14 }
 0x244   :  { %v2252_v36 = vpop.eup %2251  ;;  %v390_v37 = vadd.f32 1e-05, %v384_v33 }
 0x245   :  { %v432_v38 = vmul.f32 %v2252_v36, %v389_v18  ;;  %v426_v39 = vmul.f32 %v2250_v15, %v425_v35  ;;  %vm438_vm4 = vweird.f32 %v2252_v36  ;;  %v557_v18 = vld [vmem:[%s3211_s5 + $0x20] sm:$0xff] }
 0x246   :  { %2253 = vrsqrt.f32 %v390_v37  ;;  %vm439_vm6 = vmor %vm437_vm5, %vm438_vm4  ;;  %vm447_vm9 = vweird.f32 %v390_v37  ;;  %611 = vmatpush.msra.mxu2 %v557_v18 }
 0x247   :  { %v433_v41 = vmul.f32 %v2252_v36, %v432_v38  ;;  %v430_v43 = vsel %vm429_vm3, %v2250_v15, %v426_v39  ;;  %v573_v15 = vld [vmem:[%s3211_s5 + $0xa0] sm:$0xff]  ;;  %s3212_s5 = smov 116  }
 0x248   :  { %v460_v44 = vmul.f32 %v454_v40, %v430_v43  ;;  %646 = vmatpush.msra.mxu3 %v573_v15  ;;  %612 = vmatpush.msra.mxu2 %v556_v20  ;;  %v803_v20 = vld [vmem:[%s3179_s8 + $0x8] sm:$0xff] }
 0x249   :  { %v434_v45 = vmul.f32 0.5, %v433_v41 }
 0x24a   :  { %528 = vperm.xlu1 %2061, %v508_v42   ;;  %480 = vperm.xlu2 %2062, %v460_v44  }
 0x24b   :  { %v435_v46 = vsub.f32 1.5, %v434_v45  ;;  %647 = vmatpush.msra.mxu3 %v572_v19  ;;  %613 = vmatpush.msra.mxu2 %v555_v22  ;;  %v802_v22 = vld [vmem:[%s3179_s8] sm:$0xff] }
 0x24c   :  { %v2254_v47 = vpop.eup %2253 }
 0x24d   :  { %v442_v50 = vmul.f32 %v2254_v47, %v390_v37  ;;  %v436_v51 = vmul.f32 %v2252_v36, %v435_v46  ;;  %vm448_vm8 = vweird.f32 %v2254_v47  ;;  %648 = vmatpush.msra.mxu3 %v571_v21  ;;  %614 = vmatpush.msra.mxu2 %v554_v23  ;;  %v806_v21 = vld [vmem:[%s3179_s8 + $0x20] sm:$0xff]  ;;  %v805_v23 = vld [vmem:[%s3179_s8 + $0x18] sm:$0xff] }
 0x24e   :  { %vm449_vm10 = vmor %vm447_vm9, %vm448_vm8 }
 0x24f   :  { %v443_v53 = vmul.f32 %v2254_v47, %v442_v50  ;;  %v440_v55 = vsel %vm439_vm6, %v2252_v36, %v436_v51  ;;  %649 = vmatpush.msra.mxu3 %v570_v26  ;;  %615 = vmatpush.msra.mxu2 %v553_v27  ;;  %v804_v26 = vld [vmem:[%s3179_s8 + $0x10] sm:$0xff]  ;;  %v807_v27 = vld [vmem:[%s3179_s8 + $0x28] sm:$0xff] }
 0x250   :  { %v461_v58 = vmul.f32 %v455_v52, %v440_v55 }
 0x251   :  { %v444_v59 = vmul.f32 0.5, %v443_v53  ;;  %650 = vmatpush.msra.mxu3 %v569_v28  ;;  %v514_v32 = vpop.permute.xlu1 %513 }
 0x252   :  { %533 = vperm.xlu2 %2062, %v509_v54   ;;  %485 = vperm.xlu0 %2060, %v461_v58  }
 0x253   :  { %v445_v60 = vsub.f32 1.5, %v444_v59 }
 0x255   :  { %v446_v61 = vmul.f32 %v2254_v47, %v445_v60 }
 0x257   :  { %v450_v63 = vsel %vm449_vm10, %v2254_v47, %v446_v61 }
 0x258   :  { %v462_v3 = vmul.f32 %v456_v62, %v450_v63 }
 0x25a   :  { %490 = vperm.xlu1 %2061, %v462_v3   ;;  %538 = vperm.xlu0 %2060, %v510_v2  }
 0x294   :  { %v471_v35 = vpop.permute.xlu2 %470 }
 0x295   :  { %v495_v37 = vmul.f32 %v471_v35, %v2531_v56  ;;  %v496_v38 = vmul.f32 %v471_v35, %v2533_v57 }
 0x2a4   :  { %v466_v29 = vpop.permute.xlu0 %465  ;;  %v481_v45 = vpop.permute.xlu2 %480 }
 0x2a5   :  { %v493_v30 = vmul.f32 %v466_v29, %v2522_v48  ;;  %v494_v31 = vmul.f32 %v466_v29, %v2524_v49  ;;  %v499_v57 = vmul.f32 %v481_v45, %v2549_v8  ;;  %v500_v46 = vmul.f32 %v481_v45, %v2551_v9 }
 0x2a7   :  { %v542_v33 = vadd.f32 %v514_v32, %v494_v31  ;;  %v541_v34 = vadd.f32 %v514_v32, %v493_v30 }
 0x2a9   :  { %616 = vmatmul.f32.vlgmr.msra.gmra.mxu2 %v541_v34  ;;  %1952 = vmatmul.msk.f32.vlgmr.msra.gmra.mxu3 %vm300_vm7, %v542_v33 }
 0x2ac   :  { %v519_v36 = vpop.permute.xlu0 %518  ;;  %v534_v52 = vpop.permute.xlu2 %533 }
 0x2ad   :  { %v544_v39 = vadd.f32 %v519_v36, %v496_v38  ;;  %v543_v40 = vadd.f32 %v519_v36, %v495_v37 }
 0x2b1   :  { %619 = vmatmul.f32.gmra.mxu2 %v543_v40  ;;  %1953 = vmatmul.msk.f32.gmra.mxu3 %vm300_vm7, %v544_v39 }
 0x2b4   :  { %v476_v48 = vpop.permute.xlu1 %475  ;;  %v524_v42 = vpop.permute.xlu0 %523 }
 0x2b5   :  { %v497_v49 = vmul.f32 %v476_v48, %v2540_v0  ;;  %v498_v41 = vmul.f32 %v476_v48, %v2542_v1 }
 0x2b7   :  { %v546_v43 = vadd.f32 %v524_v42, %v498_v41  ;;  %v545_v44 = vadd.f32 %v524_v42, %v497_v49 }
 0x2b9   :  { %622 = vmatmul.f32.gmra.mxu2 %v545_v44  ;;  %1954 = vmatmul.msk.f32.gmra.mxu3 %vm300_vm7, %v546_v43 }
 0x2bc   :  { %v529_v56 = vpop.permute.xlu1 %528 }
 0x2bd   :  { %v548_v47 = vadd.f32 %v529_v56, %v500_v46  ;;  %v547_v50 = vadd.f32 %v529_v56, %v499_v57 }
 0x2c1   :  { %625 = vmatmul.f32.gmra.mxu2 %v547_v50  ;;  %1955 = vmatmul.msk.f32.gmra.mxu3 %vm300_vm7, %v548_v47 }
 0x2c4   :  { %v486_v0 = vpop.permute.xlu0 %485 }
 0x2c5   :  { %v501_v1 = vmul.f32 %v486_v0, %v2558_v16  ;;  %v502_v51 = vmul.f32 %v486_v0, %v2560_v17 }
 0x2c7   :  { %v550_v53 = vadd.f32 %v534_v52, %v502_v51  ;;  %v549_v54 = vadd.f32 %v534_v52, %v501_v1 }
 0x2c9   :  { %628 = vmatmul.f32.gmra.mxu2 %v549_v54  ;;  %1956 = vmatmul.msk.f32.gmra.mxu3 %vm300_vm7, %v550_v53 }
 0x2cc   :  { %v491_v55 = vpop.permute.xlu1 %490  ;;  %v539_v58 = vpop.permute.xlu0 %538 }
 0x2cd   :  { %v503_v8 = vmul.f32 %v491_v55, %v2567_v24  ;;  %v504_v9 = vmul.f32 %v491_v55, %v2569_v25 }
 0x2cf   :  { %v552_v59 = vadd.f32 %v539_v58, %v504_v9  ;;  %v551_v60 = vadd.f32 %v539_v58, %v503_v8  ;;  %v784_v58 = vld [vmem:[%s3178_s7] sm:$0xff] }
 0x2d1   :  { %631 = vmatmul.f32.gmra.mxu2 %v551_v60  ;;  %1957 = vmatmul.msk.f32.gmra.mxu3 %vm300_vm7, %v552_v59  ;;  %vm838_vm7 = vcmask 654336  }
 0x32c   :  { %v617_v16 = vpop.f32.mrf.mxu2  ;;  %v652_v61 = vpop.f32.mrf.mxu3 }
 0x32d   :  { %v2706_v63 = vadd.f32 %v652_v61, %v617_v16 }
 0x334   :  { %v620_v17 = vpop.f32.mrf.mxu2  ;;  %v655_v62 = vpop.f32.mrf.mxu3 }
 0x335   :  { %v2708_v2 = vadd.f32 %v655_v62, %v620_v17 }
 0x337   :  { %v2063_v3 = vpack.i.bf16 %v2706_v63, %v2708_v2 }
 0x339   :  { %2064 = vrot.lane.b32.xlu1 %v2063_v3, %s2301_s24 }
 0x33c   :  { %v623_v24 = vpop.f32.mrf.mxu2  ;;  %v658_v25 = vpop.f32.mrf.mxu3 }
 0x33d   :  { %v2713_v6 = vadd.f32 %v658_v25, %v623_v24  ;;  %v787_v25 = vld [vmem:[%s3178_s7 + $0x18] sm:$0xff] }
 0x344   :  { %v626_v4 = vpop.f32.mrf.mxu2  ;;  %v661_v5 = vpop.f32.mrf.mxu3 }
 0x345   :  { %v2715_v7 = vadd.f32 %v661_v5, %v626_v4 }
 0x347   :  { %v2083_v10 = vpack.i.bf16 %v2713_v6, %v2715_v7 }
 0x349   :  { %2084 = vrot.lane.b32.xlu1 %v2083_v10, %s2302_s2  ;;  %2069 = vrot.lane.b32.xlu2 %v2083_v10, %s2301_s24 }
 0x34c   :  { %v629_v11 = vpop.f32.mrf.mxu2  ;;  %v664_v12 = vpop.f32.mrf.mxu3 }
 0x34d   :  { %v2723_v15 = vadd.f32 %v664_v12, %v629_v11 }
 0x351   :  { %2089 = vrot.lane.b32.xlu1 %v2083_v10, %s2299_s23  ;;  %2074 = vrot.lane.b32.xlu2 %v2063_v3, %s2298_s4 }
 0x354   :  { %v632_v13 = vpop.f32.mrf.mxu2  ;;  %v667_v14 = vpop.f32.mrf.mxu3 }
 0x355   :  { %v2725_v18 = vadd.f32 %v667_v14, %v632_v13  ;;  %v790_v13 = vld [vmem:[%s3178_s7 + $0x30] sm:$0xff]  ;;  %v785_v14 = vld [vmem:[%s3178_s7 + $0x8] sm:$0xff] }
 0x357   :  { %v2123_v19 = vpack.i.bf16 %v2723_v15, %v2725_v18 }
 0x359   :  { %2079 = vrot.lane.b32.xlu2 %v2063_v3, %s2302_s2  ;;  %2124 = vrot.lane.b32.xlu1 %v2123_v19, %s2300_s1 }
 0x35a   :  { %2094 = vrot.lane.b32.xlu0 %v2123_v19, %s2302_s2 }
 0x361   :  { %2129 = vrot.lane.b32.xlu1 %v2063_v3, %s3212_s5  ;;  %2114 = vrot.lane.b32.xlu2 %v2123_v19, %s3212_s5 }
 0x362   :  { %2099 = vrot.lane.b32.xlu0 %v2123_v19, %s2299_s23 }
 0x369   :  { %2144 = vrot.lane.b32.xlu1 %v2123_v19, %s2301_s24  ;;  %2119 = vrot.lane.b32.xlu2 %v2083_v10, %s2300_s1 }
 0x36a   :  { %2104 = vrot.lane.b32.xlu0 %v2063_v3, %s2299_s23 }
 0x371   :  { %815 = vperm.xlu1 %2061, %v803_v20   ;;  %2139 = vrot.lane.b32.xlu2 %v2123_v19, %s2298_s4  ;;  %v786_v20 = vld [vmem:[%s3178_s7 + $0x10] sm:$0xff] }
 0x372   :  { %2109 = vrot.lane.b32.xlu0 %v2083_v10, %s3212_s5 }
 0x379   :  { %830 = vperm.xlu1 %2061, %v806_v21   ;;  %810 = vperm.xlu2 %2062, %v802_v22   ;;  %v793_v21 = vld [vmem:[%s3178_s7 + $0x48] sm:$0xff]  ;;  %v788_v22 = vld [vmem:[%s3178_s7 + $0x20] sm:$0xff] }
 0x37a   :  { %2134 = vrot.lane.b32.xlu0 %v2063_v3, %s2300_s1 }
 0x381   :  { %825 = vperm.xlu2 %2062, %v805_v23   ;;  %v789_v23 = vld [vmem:[%s3178_s7 + $0x28] sm:$0xff] }
 0x382   :  { %2149 = vrot.lane.b32.xlu0 %v2083_v10, %s2298_s4 }
 0x38a   :  { %820 = vperm.xlu0 %2060, %v804_v26   ;;  %v796_v26 = vld [vmem:[%s3178_s7 + $0x60] sm:$0xff] }
 0x392   :  { %835 = vperm.xlu0 %2060, %v807_v27   ;;  %v791_v27 = vld [vmem:[%s3178_s7 + $0x38] sm:$0xff] }
 0x3a3   :  { %v2070_v28 = vpop.permute.xlu2 %2069 }
 0x3a4   :  { %v2071_v29 = vunpack.i.l.bf16 %v2070_v28  ;;  %v2072_v30 = vunpack.i.h.bf16 %v2070_v28  ;;  %v792_v28 = vld [vmem:[%s3178_s7 + $0x40] sm:$0xff] }
 0x3a6   :  { %857 = vmatpush.msrb.mxu3 %v2071_v29  ;;  %v799_v29 = vld [vmem:[%s3178_s7 + $0x78] sm:$0xff] }
 0x3a8   :  { %858 = vmatpush.msrb.mxu3 %v2072_v30  ;;  %v794_v30 = vld [vmem:[%s3178_s7 + $0x50] sm:$0xff] }
 0x3ab   :  { %v2075_v31 = vpop.permute.xlu2 %2074  ;;  %v2065_v32 = vpop.permute.xlu1 %2064 }
 0x3ac   :  { %v2066_v33 = vunpack.i.l.bf16 %v2065_v32  ;;  %v2076_v34 = vunpack.i.l.bf16 %v2075_v31  ;;  %v2067_v35 = vunpack.i.h.bf16 %v2065_v32  ;;  %v2077_v36 = vunpack.i.h.bf16 %v2075_v31  ;;  %v795_v31 = vld [vmem:[%s3178_s7 + $0x58] sm:$0xff]  ;;  %v797_v32 = vld [vmem:[%s3178_s7 + $0x68] sm:$0xff] }
 0x3ae   :  { %859 = vmatpush.msrb.mxu3 %v2066_v33  ;;  %892 = vmatpush.msrb.mxu0 %v2076_v34  ;;  %v798_v33 = vld [vmem:[%s3178_s7 + $0x70] sm:$0xff]  ;;  %v800_v34 = vld [vmem:[%s3178_s7 + $0x80] sm:$0xff] }
 0x3b0   :  { %860 = vmatpush.msrb.mxu3 %v2067_v35  ;;  %893 = vmatpush.msrb.mxu0 %v2077_v36  ;;  %v801_v35 = vld [vmem:[%s3178_s7 + $0x88] sm:$0xff] }
 0x3b3   :  { %v2080_v37 = vpop.permute.xlu2 %2079 }
 0x3b4   :  { %v2081_v57 = vunpack.i.l.bf16 %v2080_v37  ;;  %v2082_v47 = vunpack.i.h.bf16 %v2080_v37 }
 0x3bb   :  { %v2115_v38 = vpop.permute.xlu2 %2114  ;;  %v2085_v48 = vpop.permute.xlu1 %2084 }
 0x3bc   :  { %v2116_v39 = vunpack.i.l.bf16 %v2115_v38  ;;  %v2117_v40 = vunpack.i.h.bf16 %v2115_v38  ;;  %v2086_v44 = vunpack.i.l.bf16 %v2085_v48  ;;  %v2087_v45 = vunpack.i.h.bf16 %v2085_v48 }
 0x3be   :  { %933 = vmatpush.msrb.mxu1 %v2116_v39 }
 0x3c0   :  { %934 = vmatpush.msrb.mxu1 %v2117_v40 }
 0x3c3   :  { %v2090_v43 = vpop.permute.xlu1 %2089  ;;  %v2120_v55 = vpop.permute.xlu2 %2119 }
 0x3c4   :  { %v2091_v0 = vunpack.i.l.bf16 %v2090_v43  ;;  %v2092_v51 = vunpack.i.h.bf16 %v2090_v43  ;;  %v2121_v16 = vunpack.i.l.bf16 %v2120_v55  ;;  %v2122_v17 = vunpack.i.h.bf16 %v2120_v55 }
 0x3cb   :  { %v2125_v1 = vpop.permute.xlu1 %2124  ;;  %v2140_v3 = vpop.permute.xlu2 %2139 }
 0x3cc   :  { %v2095_v49 = vpop.permute.xlu0 %2094  ;;  %v2126_v8 = vunpack.i.l.bf16 %v2125_v1  ;;  %v2127_v9 = vunpack.i.h.bf16 %v2125_v1  ;;  %v2141_v5 = vunpack.i.l.bf16 %v2140_v3  ;;  %v2142_v10 = vunpack.i.h.bf16 %v2140_v3 }
 0x3cd   :  { %v2096_v41 = vunpack.i.l.bf16 %v2095_v49  ;;  %v2097_v42 = vunpack.i.h.bf16 %v2095_v49 }
 0x3cf   :  { %861 = vmatpush.msrb.mxu3 %v2096_v41 }
 0x3d1   :  { %862 = vmatpush.msrb.mxu3 %v2097_v42 }
 0x3d3   :  { %863 = vmatpush.msrb.mxu3 %v2086_v44  ;;  %v2130_v59 = vpop.permute.xlu1 %2129  ;;  %v811_v38 = vpop.permute.xlu2 %810 }
 0x3d4   :  { %v2100_v56 = vpop.permute.xlu0 %2099  ;;  %v2132_v24 = vunpack.i.h.bf16 %v2130_v59 }
 0x3d5   :  { %864 = vmatpush.msrb.mxu3 %v2087_v45  ;;  %v2101_v46 = vunpack.i.l.bf16 %v2100_v56  ;;  %v2102_v50 = vunpack.i.h.bf16 %v2100_v56 }
 0x3d7   :  { %865 = vmatpush.msrb.mxu3 %v2081_v57  ;;  %894 = vmatpush.msrb.mxu0 %v2101_v46 }
 0x3d9   :  { %866 = vmatpush.msrb.mxu3 %v2082_v47  ;;  %895 = vmatpush.msrb.mxu0 %v2102_v50 }
 0x3db   :  { %867 = vmatpush.msrb.mxu3 %v2725_v18  ;;  %896 = vmatpush.msrb.mxu0 %v2091_v0 }
 0x3dc   :  { %v2105_v52 = vpop.permute.xlu0 %2104 }
 0x3dd   :  { %868 = vmatpush.msrb.mxu3 %v2723_v15  ;;  %897 = vmatpush.msrb.mxu0 %v2092_v51  ;;  %v2106_v53 = vunpack.i.l.bf16 %v2105_v52  ;;  %v2107_v54 = vunpack.i.h.bf16 %v2105_v52 }
 0x3df   :  { %869 = vmatpush.msrb.mxu3 %v2715_v7  ;;  %898 = vmatpush.msrb.mxu0 %v2106_v53 }
 0x3e1   :  { %870 = vmatpush.msrb.mxu3 %v2713_v6  ;;  %899 = vmatpush.msrb.mxu0 %v2107_v54  ;;  %v2145_v6 = vpop.permute.xlu1 %2144 }
 0x3e2   :  { %v2146_v11 = vunpack.i.l.bf16 %v2145_v6  ;;  %v2147_v12 = vunpack.i.h.bf16 %v2145_v6 }
 0x3e3   :  { %871 = vmatpush.msrb.mxu3 %v2708_v2  ;;  %900 = vmatpush.msrb.mxu0 %v2126_v8  ;;  %v2131_v2 = vunpack.i.l.bf16 %v2130_v59 }
 0x3e4   :  { %v2110_v60 = vpop.permute.xlu0 %2109 }
 0x3e5   :  { %872 = vmatpush.msrb.mxu3 %v2706_v63  ;;  %901 = vmatpush.msrb.mxu0 %v2127_v9  ;;  %v2111_v61 = vunpack.i.l.bf16 %v2110_v60  ;;  %v2112_v62 = vunpack.i.h.bf16 %v2110_v60  ;;  %v826_v9 = vpop.permute.xlu2 %825 }
 0x3e6   :  { %873 = vmatmul.f32.vlgmr.msrb.gmra.mxu3 %v784_v58 }
 0x3e7   :  { %902 = vmatpush.msrb.mxu0 %v2121_v16  ;;  %935 = vmatpush.msrb.mxu1 %v2111_v61 }
 0x3e9   :  { %903 = vmatpush.msrb.mxu0 %v2122_v17  ;;  %936 = vmatpush.msrb.mxu1 %v2112_v62  ;;  %v816_v42 = vpop.permute.xlu1 %815 }
 0x3eb   :  { %937 = vmatpush.msrb.mxu1 %v2131_v2 }
 0x3ec   :  { %v2135_v4 = vpop.permute.xlu0 %2134 }
 0x3ed   :  { %938 = vmatpush.msrb.mxu1 %v2132_v24  ;;  %v2136_v63 = vunpack.i.l.bf16 %v2135_v4  ;;  %v2137_v7 = vunpack.i.h.bf16 %v2135_v4 }
 0x3ee   :  { %876 = vmatmul.f32.gmra.mxu3 %v787_v25 }
 0x3ef   :  { %904 = vmatpush.msrb.mxu0 %v2136_v63  ;;  %939 = vmatpush.msrb.mxu1 %v2141_v5 }
 0x3f1   :  { %905 = vmatpush.msrb.mxu0 %v2137_v7  ;;  %940 = vmatpush.msrb.mxu1 %v2142_v10  ;;  %v831_v2 = vpop.permute.xlu1 %830 }
 0x3f3   :  { %906 = vmatpush.msrb.mxu0 %v2146_v11 }
 0x3f4   :  { %v2150_v15 = vpop.permute.xlu0 %2149 }
 0x3f5   :  { %907 = vmatpush.msrb.mxu0 %v2147_v12  ;;  %v2151_v18 = vunpack.i.l.bf16 %v2150_v15  ;;  %v2152_v19 = vunpack.i.h.bf16 %v2150_v15 }
 0x3f6   :  { %879 = vmatmul.f32.gmra.mxu3 %v790_v13  ;;  %908 = vmatmul.f32.vlgmr.msrb.gmra.mxu0 %v785_v14 }
 0x3f7   :  { %941 = vmatpush.msrb.mxu1 %v2151_v18 }
 0x3f9   :  { %942 = vmatpush.msrb.mxu1 %v2152_v19 }
 0x3fa   :  { %1958 = vmatmul.msk.f32.vlgmr.msrb.gmra.mxu1 %vm838_vm7, %v786_v20 }
 0x3fc   :  { %v821_v0 = vpop.permute.xlu0 %820 }
 0x3fe   :  { %882 = vmatmul.f32.gmra.mxu3 %v793_v21  ;;  %911 = vmatmul.f32.gmra.mxu0 %v788_v22 }
 0x402   :  { %1959 = vmatmul.msk.f32.gmra.mxu1 %vm838_vm7, %v789_v23 }
 0x404   :  { %v836_v7 = vpop.permute.xlu0 %835 }
 0x406   :  { %885 = vmatmul.f32.gmra.mxu3 %v796_v26  ;;  %914 = vmatmul.f32.gmra.mxu0 %v791_v27 }
 0x40a   :  { %1960 = vmatmul.msk.f32.gmra.mxu1 %vm838_vm7, %v792_v28 }
 0x40e   :  { %888 = vmatmul.f32.gmra.mxu3 %v799_v29  ;;  %917 = vmatmul.f32.gmra.mxu0 %v794_v30 }
 0x412   :  { %1961 = vmatmul.msk.f32.gmra.mxu1 %vm838_vm7, %v795_v31 }
 0x416   :  { %920 = vmatmul.f32.gmra.mxu0 %v797_v32 }
 0x41a   :  { %1962 = vmatmul.msk.f32.gmra.mxu1 %vm838_vm7, %v798_v33 }
 0x41e   :  { %923 = vmatmul.f32.gmra.mxu0 %v800_v34 }
 0x422   :  { %1963 = vmatmul.msk.f32.gmra.mxu1 %vm838_vm7, %v801_v35 }
 0x469   :  { %v874_v36 = vpop.f32.mrf.mxu3 }
 0x46a   :  { %v875_v40 = vadd.f32 %v874_v36, %v811_v38 }
 0x471   :  { %v877_v37 = vpop.f32.mrf.mxu3 }
 0x472   :  { %v878_v56 = vadd.f32 %v877_v37, %v816_v42 }
 0x473   :  { %v909_v39 = vpop.f32.mrf.mxu0 }
 0x474   :  { %v910_v48 = vadd.f32 %v909_v39, %v875_v40 }
 0x477   :  { %v944_v49 = vpop.f32.mrf.mxu1 }
 0x478   :  { %v945_v41 = vadd.f32 %v944_v49, %v910_v48 }
 0x479   :  { %v880_v44 = vpop.f32.mrf.mxu3 }
 0x47a   :  { %v963_v43 = vsel %vm962_vm12, %v945_v41, 0.0  ;;  %v881_v51 = vadd.f32 %v880_v44, %v821_v0 }
 0x47b   :  { %v912_v45 = vpop.f32.mrf.mxu0  ;;  %964 = vadd.xlane.f32.xlu2 %v963_v43 }
 0x47c   :  { %v913_v57 = vadd.f32 %v912_v45, %v878_v56 }
 0x47f   :  { %v947_v46 = vpop.f32.mrf.mxu1 }
 0x480   :  { %v948_v47 = vadd.f32 %v947_v46, %v913_v57  ;;  %v1137_v46 = vld [vmem:[%s3181_s10] sm:$0xff] }
 0x481   :  { %v883_v52 = vpop.f32.mrf.mxu3 }
 0x482   :  { %v966_v50 = vsel %vm962_vm12, %v948_v47, 0.0  ;;  %v884_v59 = vadd.f32 %v883_v52, %v826_v9 }
 0x483   :  { %v915_v1 = vpop.f32.mrf.mxu0  ;;  %967 = vadd.xlane.f32.xlu1 %v966_v50 }
 0x484   :  { %v916_v53 = vadd.f32 %v915_v1, %v881_v51 }
 0x487   :  { %v950_v54 = vpop.f32.mrf.mxu1 }
 0x488   :  { %v951_v55 = vadd.f32 %v950_v54, %v916_v53 }
 0x489   :  { %v886_v16 = vpop.f32.mrf.mxu3 }
 0x48a   :  { %v969_v8 = vsel %vm962_vm12, %v951_v55, 0.0  ;;  %v887_v24 = vadd.f32 %v886_v16, %v831_v2  ;;  %v1089_v2 = vld [vmem:[%s3180_s9] sm:$0xff] }
 0x48b   :  { %v918_v58 = vpop.f32.mrf.mxu0  ;;  %970 = vadd.xlane.f32.xlu0 %v969_v8 }
 0x48c   :  { %v919_v60 = vadd.f32 %v918_v58, %v884_v59 }
 0x48f   :  { %v953_v61 = vpop.f32.mrf.mxu1 }
 0x490   :  { %v954_v17 = vadd.f32 %v953_v61, %v919_v60 }
 0x491   :  { %v889_v5 = vpop.f32.mrf.mxu3 }
 0x492   :  { %v972_v62 = vsel %vm962_vm12, %v954_v17, 0.0  ;;  %v890_v11 = vadd.f32 %v889_v5, %v836_v7 }
 0x493   :  { %v921_v3 = vpop.f32.mrf.mxu0  ;;  %973 = vadd.xlane.f32.xlu2 %v972_v62 }
 0x494   :  { %v922_v25 = vadd.f32 %v921_v3, %v887_v24 }
 0x497   :  { %v956_v4 = vpop.f32.mrf.mxu1 }
 0x498   :  { %v957_v63 = vadd.f32 %v956_v4, %v922_v25 }
 0x49a   :  { %v975_v6 = vsel %vm962_vm12, %v957_v63, 0.0 }
 0x49b   :  { %v924_v10 = vpop.f32.mrf.mxu0  ;;  %976 = vadd.xlane.f32.xlu1 %v975_v6 }
 0x49c   :  { %v925_v12 = vadd.f32 %v924_v10, %v890_v11 }
 0x49f   :  { %v959_v13 = vpop.f32.mrf.mxu1 }
 0x4a0   :  { %v960_v14 = vadd.f32 %v959_v13, %v925_v12  ;;  %v1090_v13 = vld [vmem:[%s3180_s9 + $0x8] sm:$0xff] }
 0x4a2   :  { %v978_v15 = vsel %vm962_vm12, %v960_v14, 0.0 }
 0x4a3   :  { %979 = vadd.xlane.f32.xlu0 %v978_v15 }
 0x4ee   :  { %v965_v18 = vpop.xlane.xlu2 %964 }
 0x4ef   :  { %v981_v19 = vmul.f32 0.023809524, %v965_v18  ;;  %v1138_v18 = vld [vmem:[%s3181_s10 + $0x8] sm:$0xff] }
 0x4f1   :  { %v2832_v20 = vsub.f32 %v945_v41, %v981_v19 }
 0x4f3   :  { %v993_v21 = vmul.f32 %v2832_v20, %v2832_v20 }
 0x4f5   :  { %v999_v22 = vsel %vm962_vm12, %v993_v21, 0.0 }
 0x4f6   :  { %v968_v23 = vpop.xlane.xlu1 %967  ;;  %1000 = vadd.xlane.f32.xlu2 %v999_v22 }
 0x4f7   :  { %v982_v26 = vmul.f32 0.023809524, %v968_v23 }
 0x4f9   :  { %v2837_v27 = vsub.f32 %v948_v47, %v982_v26  ;;  %v1139_v47 = vld [vmem:[%s3181_s10 + $0x10] sm:$0xff]  ;;  %v1184_v26 = vld [vmem:[%s3213_s30 + $0x28] sm:$0x3] }
 0x4fa   :  { %1964 = vmatpush.msk.msrb.mxu2 %vm596_vm11, %v1184_v26 }
 0x4fb   :  { %v994_v28 = vmul.f32 %v2837_v27, %v2837_v27 }
 0x4fd   :  { %v1002_v29 = vsel %vm962_vm12, %v994_v28, 0.0  ;;  %v1183_v28 = vld [vmem:[%s3213_s30 + $0x20] sm:$0xff] }
 0x4fe   :  { %v971_v30 = vpop.xlane.xlu0 %970  ;;  %1003 = vadd.xlane.f32.xlu1 %v1002_v29  ;;  %1217 = vmatpush.msrb.mxu2 %v1183_v28 }
 0x4ff   :  { %v983_v31 = vmul.f32 0.023809524, %v971_v30 }
 0x501   :  { %v2842_v32 = vsub.f32 %v951_v55, %v983_v31 }
 0x503   :  { %v995_v33 = vmul.f32 %v2842_v32, %v2842_v32 }
 0x505   :  { %v1005_v34 = vsel %vm962_vm12, %v995_v33, 0.0  ;;  %v1182_v33 = vld [vmem:[%s3213_s30 + $0x18] sm:$0xff] }
 0x506   :  { %1006 = vadd.xlane.f32.xlu0 %v1005_v34  ;;  %v974_v35 = vpop.xlane.xlu2 %973  ;;  %1218 = vmatpush.msrb.mxu2 %v1182_v33 }
 0x507   :  { %v984_v36 = vmul.f32 0.023809524, %v974_v35 }
 0x509   :  { %v2847_v37 = vsub.f32 %v954_v17, %v984_v36  ;;  %v1091_v36 = vld [vmem:[%s3180_s9 + $0x10] sm:$0xff] }
 0x50b   :  { %v996_v38 = vmul.f32 %v2847_v37, %v2847_v37 }
 0x50d   :  { %v1008_v39 = vsel %vm962_vm12, %v996_v38, 0.0  ;;  %v1181_v38 = vld [vmem:[%s3213_s30 + $0x10] sm:$0xff] }
 0x50e   :  { %v977_v40 = vpop.xlane.xlu1 %976  ;;  %1009 = vadd.xlane.f32.xlu2 %v1008_v39  ;;  %1219 = vmatpush.msrb.mxu2 %v1181_v38 }
 0x50f   :  { %v985_v48 = vmul.f32 0.023809524, %v977_v40 }
 0x511   :  { %v2852_v49 = vsub.f32 %v957_v63, %v985_v48 }
 0x513   :  { %v997_v41 = vmul.f32 %v2852_v49, %v2852_v49 }
 0x515   :  { %v1011_v42 = vsel %vm962_vm12, %v997_v41, 0.0 }
 0x516   :  { %v980_v43 = vpop.xlane.xlu0 %979  ;;  %1012 = vadd.xlane.f32.xlu1 %v1011_v42 }
 0x517   :  { %v986_v44 = vmul.f32 0.023809524, %v980_v43 }
 0x519   :  { %v2857_v45 = vsub.f32 %v960_v14, %v986_v44 }
 0x51b   :  { %v998_v56 = vmul.f32 %v2857_v45, %v2857_v45 }
 0x51d   :  { %v1014_v57 = vsel %vm962_vm12, %v998_v56, 0.0 }
 0x51e   :  { %1015 = vadd.xlane.f32.xlu0 %v1014_v57 }
 0x52f   :  { %1145 = vperm.xlu1 %2061, %v1137_v46  }
 0x537   :  { %1155 = vperm.xlu1 %2061, %v1139_v47  }
 0x569   :  { %v1001_v50 = vpop.xlane.xlu2 %1000 }
 0x56a   :  { %v1017_v0 = vmul.f32 0.023809524, %v1001_v50  ;;  %v1092_v50 = vld [vmem:[%s3180_s9 + $0x18] sm:$0xff] }
 0x56c   :  { %v1023_v1 = vadd.f32 1e-05, %v1017_v0 }
 0x56e   :  { %2255 = vrsqrt.f32 %v1023_v1  ;;  %vm1035_vm14 = vweird.f32 %v1023_v1 }
 0x571   :  { %v1004_v51 = vpop.xlane.xlu1 %1003 }
 0x572   :  { %v1018_v52 = vmul.f32 0.023809524, %v1004_v51 }
 0x574   :  { %v2256_v53 = vpop.eup %2255  ;;  %v1024_v54 = vadd.f32 1e-05, %v1018_v52 }
 0x575   :  { %v1030_v55 = vmul.f32 %v2256_v53, %v1023_v1  ;;  %vm1036_vm13 = vweird.f32 %v2256_v53  ;;  %v1140_v1 = vld [vmem:[%s3181_s10 + $0x18] sm:$0xff] }
 0x576   :  { %2257 = vrsqrt.f32 %v1024_v54  ;;  %vm1037_vm15 = vmor %vm1035_vm14, %vm1036_vm13  ;;  %vm1045_vm1 = vweird.f32 %v1024_v54 }
 0x577   :  { %v1031_v8 = vmul.f32 %v2256_v53, %v1030_v55 }
 0x579   :  { %v1032_v9 = vmul.f32 0.5, %v1031_v8  ;;  %v1007_v58 = vpop.xlane.xlu0 %1006 }
 0x57a   :  { %v1019_v59 = vmul.f32 0.023809524, %v1007_v58  ;;  %v1093_v58 = vld [vmem:[%s3180_s9 + $0x20] sm:$0xff] }
 0x57b   :  { %v1033_v60 = vsub.f32 1.5, %v1032_v9 }
 0x57c   :  { %v2258_v16 = vpop.eup %2257  ;;  %v1025_v61 = vadd.f32 1e-05, %v1019_v59 }
 0x57d   :  { %v1040_v17 = vmul.f32 %v2258_v16, %v1024_v54  ;;  %v1034_v62 = vmul.f32 %v2256_v53, %v1033_v60  ;;  %vm1046_vm0 = vweird.f32 %v2258_v16 }
 0x57e   :  { %2259 = vrsqrt.f32 %v1025_v61  ;;  %vm1047_vm2 = vmor %vm1045_vm1, %vm1046_vm0  ;;  %vm1055_vm4 = vweird.f32 %v1025_v61 }
 0x57f   :  { %v1041_v3 = vmul.f32 %v2258_v16, %v1040_v17  ;;  %v1038_v24 = vsel %vm1037_vm15, %v2256_v53, %v1034_v62 }
 0x580   :  { %v1095_v25 = vmul.f32 %v1089_v2, %v1038_v24 }
 0x581   :  { %v1042_v4 = vmul.f32 0.5, %v1041_v3  ;;  %v1010_v63 = vpop.xlane.xlu2 %1009  ;;  %v1094_v3 = vld [vmem:[%s3180_s9 + $0x28] sm:$0xff] }
 0x582   :  { %v1020_v5 = vmul.f32 0.023809524, %v1010_v63  ;;  %1103 = vperm.xlu2 %2062, %v1095_v25   ;;  %v1142_v25 = vld [vmem:[%s3181_s10 + $0x28] sm:$0xff] }
 0x583   :  { %v1043_v6 = vsub.f32 1.5, %v1042_v4  ;;  %v1180_v63 = vld [vmem:[%s3213_s30 + $0x8] sm:$0xff] }
 0x584   :  { %v2260_v7 = vpop.eup %2259  ;;  %v1026_v10 = vadd.f32 1e-05, %v1020_v5  ;;  %1220 = vmatpush.msrb.mxu2 %v1180_v63  ;;  %v1179_v5 = vld [vmem:[%s3213_s30] sm:$0xff] }
 0x585   :  { %v1050_v11 = vmul.f32 %v2260_v7, %v1025_v61  ;;  %v1044_v12 = vmul.f32 %v2258_v16, %v1043_v6  ;;  %vm1056_vm3 = vweird.f32 %v2260_v7 }
 0x586   :  { %2261 = vrsqrt.f32 %v1026_v10  ;;  %vm1057_vm5 = vmor %vm1055_vm4, %vm1056_vm3  ;;  %vm1065_vm8 = vweird.f32 %v1026_v10  ;;  %1221 = vmatpush.msrb.mxu2 %v1179_v5 }
 0x587   :  { %v1051_v14 = vmul.f32 %v2260_v7, %v1050_v11  ;;  %v1048_v15 = vsel %vm1047_vm2, %v2258_v16, %v1044_v12  ;;  %v1141_v16 = vld [vmem:[%s3181_s10 + $0x20] sm:$0xff] }
 0x588   :  { %v1096_v19 = vmul.f32 %v1090_v13, %v1048_v15 }
 0x589   :  { %v1052_v21 = vmul.f32 0.5, %v1051_v14  ;;  %v1013_v22 = vpop.xlane.xlu1 %1012 }
 0x58a   :  { %v1021_v23 = vmul.f32 0.023809524, %v1013_v22  ;;  %1108 = vperm.xlu0 %2060, %v1096_v19   ;;  %1150 = vperm.xlu2 %2062, %v1138_v18  }
 0x58b   :  { %v1053_v29 = vsub.f32 1.5, %v1052_v21 }
 0x58c   :  { %v2262_v30 = vpop.eup %2261  ;;  %v1027_v31 = vadd.f32 1e-05, %v1021_v23 }
 0x58d   :  { %v1060_v34 = vmul.f32 %v2262_v30, %v1026_v10  ;;  %v1054_v35 = vmul.f32 %v2260_v7, %v1053_v29  ;;  %vm1066_vm6 = vweird.f32 %v2262_v30 }
 0x58e   :  { %2263 = vrsqrt.f32 %v1027_v31  ;;  %vm1067_vm9 = vmor %vm1065_vm8, %vm1066_vm6  ;;  %vm1075_vm11 = vweird.f32 %v1027_v31 }
 0x58f   :  { %v1061_v39 = vmul.f32 %v2262_v30, %v1060_v34  ;;  %v1058_v40 = vsel %vm1057_vm5, %v2260_v7, %v1054_v35 }
 0x590   :  { %v1097_v48 = vmul.f32 %v1091_v36, %v1058_v40 }
 0x591   :  { %v1062_v41 = vmul.f32 0.5, %v1061_v39  ;;  %v1016_v42 = vpop.xlane.xlu0 %1015 }
 0x592   :  { %v1022_v43 = vmul.f32 0.023809524, %v1016_v42  ;;  %1113 = vperm.xlu0 %2060, %v1097_v48   ;;  %v1389_v42 = vld [vmem:[%s3183_s12 + $0x38] sm:$0xff] }
 0x593   :  { %v1063_v44 = vsub.f32 1.5, %v1062_v41 }
 0x594   :  { %v2264_v56 = vpop.eup %2263  ;;  %v1028_v57 = vadd.f32 1e-05, %v1022_v43  ;;  %v1386_v43 = vld [vmem:[%s3183_s12 + $0x20] sm:$0xff] }
 0x595   :  { %v1070_v46 = vmul.f32 %v2264_v56, %v1027_v31  ;;  %v1064_v47 = vmul.f32 %v2262_v30, %v1063_v44  ;;  %vm1076_vm10 = vweird.f32 %v2264_v56  ;;  %v1390_v44 = vld [vmem:[%s3183_s12 + $0x40] sm:$0xff] }
 0x596   :  { %2265 = vrsqrt.f32 %v1028_v57  ;;  %vm1077_vm13 = vmor %vm1075_vm11, %vm1076_vm10  ;;  %vm1085_vm15 = vweird.f32 %v1028_v57  ;;  %vm1788_vm10 = vcmask 1046528   ;;  %vm1775_vm11 = vcmask 56320  }
 0x597   :  { %v1071_v0 = vmul.f32 %v2264_v56, %v1070_v46  ;;  %v1068_v51 = vsel %vm1067_vm9, %v2262_v30, %v1064_v47  ;;  %v1384_v46 = vld [vmem:[%s3183_s12 + $0x10] sm:$0xff]  ;;  %vm1704_vm9 = vcmask 588800  }
 0x598   :  { %v1098_v52 = vmul.f32 %v1092_v50, %v1068_v51  ;;  %v1388_v47 = vld [vmem:[%s3183_s12 + $0x30] sm:$0xff]  ;;  %v1385_v50 = vld [vmem:[%s3183_s12 + $0x18] sm:$0xff] }
 0x599   :  { %v1072_v53 = vmul.f32 0.5, %v1071_v0  ;;  %v1382_v0 = vld [vmem:[%s3183_s12] sm:$0xff] }
 0x59a   :  { %1160 = vperm.xlu0 %2060, %v1140_v1   ;;  %1118 = vperm.xlu2 %2062, %v1098_v52  }
 0x59b   :  { %v1073_v54 = vsub.f32 1.5, %v1072_v53 }
 0x59c   :  { %v2266_v55 = vpop.eup %2265 }
 0x59d   :  { %v1080_v8 = vmul.f32 %v2266_v55, %v1028_v57  ;;  %v1074_v9 = vmul.f32 %v2264_v56, %v1073_v54  ;;  %vm1086_vm14 = vweird.f32 %v2266_v55  ;;  %v1387_v57 = vld [vmem:[%s3183_s12 + $0x28] sm:$0xff] }
 0x59e   :  { %vm1087_vm0 = vmor %vm1085_vm15, %vm1086_vm14 }
 0x59f   :  { %v1081_v59 = vmul.f32 %v2266_v55, %v1080_v8  ;;  %v1078_v60 = vsel %vm1077_vm13, %v2264_v56, %v1074_v9  ;;  %v1383_v56 = vld [vmem:[%s3183_s12 + $0x8] sm:$0xff] }
 0x5a0   :  { %v1099_v61 = vmul.f32 %v1093_v58, %v1078_v60 }
 0x5a1   :  { %v1082_v17 = vmul.f32 0.5, %v1081_v59  ;;  %v1146_v10 = vpop.permute.xlu1 %1145 }
 0x5a2   :  { %1123 = vperm.xlu1 %2061, %v1099_v61   ;;  %1165 = vperm.xlu2 %2062, %v1141_v16  }
 0x5a3   :  { %v1083_v62 = vsub.f32 1.5, %v1082_v17 }
 0x5a5   :  { %v1084_v2 = vmul.f32 %v2266_v55, %v1083_v62 }
 0x5a7   :  { %v1088_v24 = vsel %vm1087_vm0, %v2266_v55, %v1084_v2 }
 0x5a8   :  { %v1100_v4 = vmul.f32 %v1094_v3, %v1088_v24 }
 0x5a9   :  { %v1156_v21 = vpop.permute.xlu1 %1155 }
 0x5aa   :  { %1128 = vperm.xlu0 %2060, %v1100_v4   ;;  %1170 = vperm.xlu1 %2061, %v1142_v25  }
 0x5dc   :  { %v1104_v6 = vpop.permute.xlu2 %1103 }
 0x5dd   :  { %v1131_v7 = vmul.f32 %v1104_v6, %v2832_v20 }
 0x5df   :  { %v1173_v11 = vadd.f32 %v1146_v10, %v1131_v7 }
 0x5e1   :  { %1965 = vmatmul.msk.f32.vlgmr.msrb.gmra.mxu2 %vm962_vm12, %v1173_v11 }
 0x5e4   :  { %v1151_v14 = vpop.permute.xlu2 %1150 }
 0x5f4   :  { %v1119_v23 = vpop.permute.xlu2 %1118 }
 0x5f5   :  { %v1134_v26 = vmul.f32 %v1119_v23, %v2847_v37  ;;  %v1355_v23 = vld [vmem:[%s3182_s11] sm:$0xff] }
 0x5fc   :  { %v1109_v12 = vpop.permute.xlu0 %1108  ;;  %v1166_v30 = vpop.permute.xlu2 %1165 }
 0x5fd   :  { %v1132_v13 = vmul.f32 %v1109_v12, %v2837_v27 }
 0x5ff   :  { %v1174_v15 = vadd.f32 %v1151_v14, %v1132_v13 }
 0x601   :  { %1966 = vmatmul.msk.f32.gmra.mxu2 %vm962_vm12, %v1174_v15 }
 0x604   :  { %v1114_v18 = vpop.permute.xlu0 %1113 }
 0x605   :  { %v1133_v19 = vmul.f32 %v1114_v18, %v2842_v32 }
 0x607   :  { %v1175_v22 = vadd.f32 %v1156_v21, %v1133_v19 }
 0x609   :  { %1967 = vmatmul.msk.f32.gmra.mxu2 %vm962_vm12, %v1175_v22 }
 0x60c   :  { %v1161_v20 = vpop.permute.xlu0 %1160 }
 0x60d   :  { %v1176_v28 = vadd.f32 %v1161_v20, %v1134_v26 }
 0x611   :  { %1968 = vmatmul.msk.f32.gmra.mxu2 %vm962_vm12, %v1176_v28 }
 0x614   :  { %v1124_v29 = vpop.permute.xlu1 %1123 }
 0x615   :  { %v1135_v27 = vmul.f32 %v1124_v29, %v2852_v49 }
 0x617   :  { %v1177_v31 = vadd.f32 %v1166_v30, %v1135_v27 }
 0x619   :  { %1969 = vmatmul.msk.f32.gmra.mxu2 %vm962_vm12, %v1177_v31 }
 0x61c   :  { %v1129_v33 = vpop.permute.xlu0 %1128  ;;  %v1171_v34 = vpop.permute.xlu1 %1170 }
 0x61d   :  { %v1136_v32 = vmul.f32 %v1129_v33, %v2857_v45 }
 0x61f   :  { %v1178_v35 = vadd.f32 %v1171_v34, %v1136_v32  ;;  %v1358_v34 = vld [vmem:[%s3182_s11 + $0x18] sm:$0xff] }
 0x621   :  { %1970 = vmatmul.msk.f32.gmra.mxu2 %vm962_vm12, %v1178_v35 }
 0x664   :  { %v2929_v36 = vpop.f32.mrf.mxu2 }
 0x684   :  { %v2931_v37 = vpop.f32.mrf.mxu2 }
 0x685   :  { %v2153_v38 = vpack.i.bf16 %v2929_v36, %v2931_v37 }
 0x687   :  { %2154 = vrot.lane.b32.xlu0 %v2153_v38, %s2301_s24 }
 0x68c   :  { %v2936_v49 = vpop.f32.mrf.mxu2 }
 0x694   :  { %v2938_v39 = vpop.f32.mrf.mxu2 }
 0x695   :  { %v2173_v45 = vpack.i.bf16 %v2936_v49, %v2938_v39 }
 0x697   :  { %2174 = vrot.lane.b32.xlu0 %v2173_v45, %s2302_s2  ;;  %2159 = vrot.lane.b32.xlu2 %v2173_v45, %s2301_s24 }
 0x69c   :  { %v2944_v40 = vpop.f32.mrf.mxu2 }
 0x69f   :  { %2179 = vrot.lane.b32.xlu0 %v2173_v45, %s2299_s23  ;;  %2164 = vrot.lane.b32.xlu2 %v2153_v38, %s2298_s4 }
 0x6a4   :  { %v2948_v48 = vpop.f32.mrf.mxu2 }
 0x6a5   :  { %v2213_v41 = vpack.i.bf16 %v2944_v40, %v2948_v48 }
 0x6a7   :  { %2169 = vrot.lane.b32.xlu2 %v2153_v38, %s2302_s2  ;;  %2214 = vrot.lane.b32.xlu0 %v2213_v41, %s2300_s1 }
 0x6a8   :  { %2184 = vrot.lane.b32.xlu1 %v2213_v41, %s2302_s2 }
 0x6af   :  { %2219 = vrot.lane.b32.xlu0 %v2153_v38, %s3212_s5  ;;  %2204 = vrot.lane.b32.xlu2 %v2213_v41, %s3212_s5 }
 0x6b0   :  { %2189 = vrot.lane.b32.xlu1 %v2213_v41, %s2299_s23 }
 0x6b7   :  { %2234 = vrot.lane.b32.xlu0 %v2213_v41, %s2301_s24  ;;  %2209 = vrot.lane.b32.xlu2 %v2173_v45, %s2300_s1 }
 0x6b8   :  { %2194 = vrot.lane.b32.xlu1 %v2153_v38, %s2299_s23 }
 0x6bf   :  { %1428 = vperm.xlu0 %2060, %v1389_v42   ;;  %2229 = vrot.lane.b32.xlu2 %v2213_v41, %s2298_s4  ;;  %v1356_v41 = vld [vmem:[%s3182_s11 + $0x8] sm:$0xff] }
 0x6c0   :  { %2199 = vrot.lane.b32.xlu1 %v2173_v45, %s3212_s5 }
 0x6c7   :  { %1413 = vperm.xlu0 %2060, %v1386_v43   ;;  %1433 = vperm.xlu2 %2062, %v1390_v44  }
 0x6c8   :  { %2224 = vrot.lane.b32.xlu1 %v2153_v38, %s2300_s1 }
 0x6cf   :  { %1398 = vperm.xlu0 %2060, %v1383_v56   ;;  %1418 = vperm.xlu2 %2062, %v1387_v57   ;;  %v1357_v56 = vld [vmem:[%s3182_s11 + $0x10] sm:$0xff]  ;;  %v1364_v57 = vld [vmem:[%s3182_s11 + $0x48] sm:$0xff] }
 0x6d0   :  { %2239 = vrot.lane.b32.xlu1 %v2173_v45, %s2298_s4 }
 0x6d7   :  { %1403 = vperm.xlu2 %2062, %v1384_v46   ;;  %v1359_v46 = vld [vmem:[%s3182_s11 + $0x20] sm:$0xff] }
 0x6d8   :  { %1423 = vperm.xlu1 %2061, %v1388_v47   ;;  %v1360_v47 = vld [vmem:[%s3182_s11 + $0x28] sm:$0xff] }
 0x6e0   :  { %1408 = vperm.xlu1 %2061, %v1385_v50   ;;  %v1367_v50 = vld [vmem:[%s3182_s11 + $0x60] sm:$0xff] }
 0x6e8   :  { %1393 = vperm.xlu1 %2061, %v1382_v0   ;;  %v1362_v0 = vld [vmem:[%s3182_s11 + $0x38] sm:$0xff] }
 0x6f1   :  { %v2160_v1 = vpop.permute.xlu2 %2159 }
 0x6f2   :  { %v2161_v51 = vunpack.i.l.bf16 %v2160_v1  ;;  %v2162_v52 = vunpack.i.h.bf16 %v2160_v1  ;;  %v1363_v1 = vld [vmem:[%s3182_s11 + $0x40] sm:$0xff] }
 0x6f4   :  { %1463 = vmatpush.msra.mxu3 %v2161_v51  ;;  %v1370_v51 = vld [vmem:[%s3182_s11 + $0x78] sm:$0xff] }
 0x6f6   :  { %1464 = vmatpush.msra.mxu3 %v2162_v52  ;;  %v1365_v52 = vld [vmem:[%s3182_s11 + $0x50] sm:$0xff] }
 0x6f9   :  { %v2155_v53 = vpop.permute.xlu0 %2154  ;;  %v2165_v54 = vpop.permute.xlu2 %2164 }
 0x6fa   :  { %v2156_v55 = vunpack.i.l.bf16 %v2155_v53  ;;  %v2166_v8 = vunpack.i.l.bf16 %v2165_v54  ;;  %v2157_v9 = vunpack.i.h.bf16 %v2155_v53  ;;  %v2167_v58 = vunpack.i.h.bf16 %v2165_v54  ;;  %v1366_v53 = vld [vmem:[%s3182_s11 + $0x58] sm:$0xff]  ;;  %v1373_v54 = vld [vmem:[%s3182_s11 + $0x90] sm:$0xff] }
 0x6fc   :  { %1465 = vmatpush.msra.mxu3 %v2156_v55  ;;  %1507 = vmatpush.msra.mxu0 %v2166_v8  ;;  %v1368_v55 = vld [vmem:[%s3182_s11 + $0x68] sm:$0xff]  ;;  %v1369_v8 = vld [vmem:[%s3182_s11 + $0x70] sm:$0xff] }
 0x6fe   :  { %1466 = vmatpush.msra.mxu3 %v2157_v9  ;;  %1508 = vmatpush.msra.mxu0 %v2167_v58  ;;  %v1376_v9 = vld [vmem:[%s3182_s11 + $0xa8] sm:$0xff]  ;;  %v1371_v58 = vld [vmem:[%s3182_s11 + $0x80] sm:$0xff] }
 0x701   :  { %v2170_v59 = vpop.permute.xlu2 %2169 }
 0x702   :  { %v2171_v5 = vunpack.i.l.bf16 %v2170_v59  ;;  %v2172_v7 = vunpack.i.h.bf16 %v2170_v59  ;;  %v1372_v59 = vld [vmem:[%s3182_s11 + $0x88] sm:$0xff] }
 0x709   :  { %v2205_v60 = vpop.permute.xlu2 %2204  ;;  %v2175_v17 = vpop.permute.xlu0 %2174 }
 0x70a   :  { %v2206_v16 = vunpack.i.l.bf16 %v2205_v60  ;;  %v2207_v61 = vunpack.i.h.bf16 %v2205_v60  ;;  %v2176_v25 = vunpack.i.l.bf16 %v2175_v17  ;;  %v2177_v4 = vunpack.i.h.bf16 %v2175_v17  ;;  %v1379_v60 = vld [vmem:[%s3182_s11 + $0xc0] sm:$0xff]  ;;  %v1377_v17 = vld [vmem:[%s3182_s11 + $0xb0] sm:$0xff] }
 0x70c   :  { %1557 = vmatpush.msra.mxu1 %v2206_v16  ;;  %v1374_v16 = vld [vmem:[%s3182_s11 + $0x98] sm:$0xff] }
 0x70e   :  { %1558 = vmatpush.msra.mxu1 %v2207_v61  ;;  %v1375_v61 = vld [vmem:[%s3182_s11 + $0xa0] sm:$0xff] }
 0x711   :  { %v2180_v24 = vpop.permute.xlu0 %2179  ;;  %v2210_v19 = vpop.permute.xlu2 %2209 }
 0x712   :  { %v2181_v11 = vunpack.i.l.bf16 %v2180_v24  ;;  %v2182_v13 = vunpack.i.h.bf16 %v2180_v24  ;;  %v2211_v28 = vunpack.i.l.bf16 %v2210_v19  ;;  %v2212_v27 = vunpack.i.h.bf16 %v2210_v19 }
 0x719   :  { %v2215_v12 = vpop.permute.xlu0 %2214  ;;  %v2230_v33 = vpop.permute.xlu2 %2229 }
 0x71a   :  { %v2185_v62 = vpop.permute.xlu1 %2184  ;;  %v2216_v21 = vunpack.i.l.bf16 %v2215_v12  ;;  %v2217_v22 = vunpack.i.h.bf16 %v2215_v12 }
 0x71b   :  { %v2186_v2 = vunpack.i.l.bf16 %v2185_v62  ;;  %v2187_v3 = vunpack.i.h.bf16 %v2185_v62  ;;  %v1378_v62 = vld [vmem:[%s3182_s11 + $0xb8] sm:$0xff] }
 0x71d   :  { %1467 = vmatpush.msra.mxu3 %v2186_v2  ;;  %v1380_v2 = vld [vmem:[%s3182_s11 + $0xc8] sm:$0xff] }
 0x71f   :  { %1468 = vmatpush.msra.mxu3 %v2187_v3  ;;  %v1381_v3 = vld [vmem:[%s3182_s11 + $0xd0] sm:$0xff] }
 0x721   :  { %1469 = vmatpush.msra.mxu3 %v2176_v25  ;;  %v2220_v20 = vpop.permute.xlu0 %2219 }
 0x722   :  { %v2190_v63 = vpop.permute.xlu1 %2189  ;;  %v2221_v31 = vunpack.i.l.bf16 %v2220_v20  ;;  %v2222_v32 = vunpack.i.h.bf16 %v2220_v20 }
 0x723   :  { %v2191_v6 = vunpack.i.l.bf16 %v2190_v63  ;;  %1470 = vmatpush.msra.mxu3 %v2177_v4  ;;  %v2192_v10 = vunpack.i.h.bf16 %v2190_v63 }
 0x725   :  { %1471 = vmatpush.msra.mxu3 %v2171_v5  ;;  %1509 = vmatpush.msra.mxu0 %v2191_v6  ;;  %v1434_v5 = vpop.permute.xlu2 %1433 }
 0x727   :  { %1472 = vmatpush.msra.mxu3 %v2172_v7  ;;  %1510 = vmatpush.msra.mxu0 %v2192_v10 }
 0x729   :  { %1473 = vmatpush.msra.mxu3 %v2948_v48  ;;  %1511 = vmatpush.msra.mxu0 %v2181_v11  ;;  %v1361_v48 = vld [vmem:[%s3182_s11 + $0x30] sm:$0xff] }
 0x72a   :  { %v2195_v14 = vpop.permute.xlu1 %2194 }
 0x72b   :  { %v2196_v15 = vunpack.i.l.bf16 %v2195_v14  ;;  %1474 = vmatpush.msra.mxu3 %v2944_v40  ;;  %1512 = vmatpush.msra.mxu0 %v2182_v13  ;;  %v2197_v18 = vunpack.i.h.bf16 %v2195_v14 }
 0x72d   :  { %1475 = vmatpush.msra.mxu3 %v2938_v39  ;;  %1513 = vmatpush.msra.mxu0 %v2196_v15  ;;  %v1419_v14 = vpop.permute.xlu2 %1418 }
 0x72f   :  { %1476 = vmatpush.msra.mxu3 %v2936_v49  ;;  %1514 = vmatpush.msra.mxu0 %v2197_v18  ;;  %v2232_v49 = vunpack.i.h.bf16 %v2230_v33 }
 0x731   :  { %1477 = vmatpush.msra.mxu3 %v2931_v37  ;;  %1515 = vmatpush.msra.mxu0 %v2216_v21  ;;  %v2231_v37 = vunpack.i.l.bf16 %v2230_v33 }
 0x732   :  { %v2200_v26 = vpop.permute.xlu1 %2199 }
 0x733   :  { %v2201_v29 = vunpack.i.l.bf16 %v2200_v26  ;;  %1478 = vmatpush.msra.mxu3 %v2929_v36  ;;  %1516 = vmatpush.msra.mxu0 %v2217_v22  ;;  %v2202_v30 = vunpack.i.h.bf16 %v2200_v26  ;;  %v2235_v36 = vpop.permute.xlu0 %2234 }
 0x734   :  { %1479 = vmatmul.f32.vlgmr.msra.gmra.mxu3 %v1355_v23  ;;  %v2236_v45 = vunpack.i.l.bf16 %v2235_v36  ;;  %v2237_v40 = vunpack.i.h.bf16 %v2235_v36 }
 0x735   :  { %1517 = vmatpush.msra.mxu0 %v2211_v28  ;;  %1559 = vmatpush.msra.mxu1 %v2201_v29  ;;  %v1404_v29 = vpop.permute.xlu2 %1403 }
 0x737   :  { %1518 = vmatpush.msra.mxu0 %v2212_v27  ;;  %1560 = vmatpush.msra.mxu1 %v2202_v30 }
 0x739   :  { %1561 = vmatpush.msra.mxu1 %v2221_v31 }
 0x73a   :  { %v2225_v35 = vpop.permute.xlu1 %2224 }
 0x73b   :  { %v2226_v38 = vunpack.i.l.bf16 %v2225_v35  ;;  %1562 = vmatpush.msra.mxu1 %v2222_v32  ;;  %v2227_v39 = vunpack.i.h.bf16 %v2225_v35  ;;  %v1429_v25 = vpop.permute.xlu0 %1428 }
 0x73c   :  { %1482 = vmatmul.f32.gmra.mxu3 %v1358_v34 }
 0x73d   :  { %1519 = vmatpush.msra.mxu0 %v2226_v38  ;;  %1563 = vmatpush.msra.mxu1 %v2231_v37 }
 0x73f   :  { %1520 = vmatpush.msra.mxu0 %v2227_v39  ;;  %1564 = vmatpush.msra.mxu1 %v2232_v49 }
 0x741   :  { %1521 = vmatpush.msra.mxu0 %v2236_v45 }
 0x742   :  { %v2240_v42 = vpop.permute.xlu1 %2239 }
 0x743   :  { %v2241_v43 = vunpack.i.l.bf16 %v2240_v42  ;;  %1522 = vmatpush.msra.mxu0 %v2237_v40  ;;  %v2242_v44 = vunpack.i.h.bf16 %v2240_v42  ;;  %v1414_v6 = vpop.permute.xlu0 %1413 }
 0x744   :  { %1485 = vmatmul.f32.gmra.mxu3 %v1361_v48  ;;  %1523 = vmatmul.f32.vlgmr.msra.gmra.mxu0 %v1356_v41 }
 0x745   :  { %1565 = vmatpush.msra.mxu1 %v2241_v43 }
 0x747   :  { %1566 = vmatpush.msra.mxu1 %v2242_v44 }
 0x748   :  { %1971 = vmatmul.msk.f32.vlgmr.msra.gmra.mxu1 %vm838_vm7, %v1357_v56 }
 0x74a   :  { %v1424_v24 = vpop.permute.xlu1 %1423 }
 0x74b   :  { %v1399_v19 = vpop.permute.xlu0 %1398 }
 0x74c   :  { %1488 = vmatmul.f32.gmra.mxu3 %v1364_v57  ;;  %1526 = vmatmul.f32.gmra.mxu0 %v1359_v46 }
 0x750   :  { %1972 = vmatmul.msk.f32.gmra.mxu1 %vm838_vm7, %v1360_v47 }
 0x752   :  { %v1409_v4 = vpop.permute.xlu1 %1408 }
 0x754   :  { %1491 = vmatmul.f32.gmra.mxu3 %v1367_v50  ;;  %1529 = vmatmul.f32.gmra.mxu0 %v1362_v0 }
 0x758   :  { %1973 = vmatmul.msk.f32.gmra.mxu1 %vm838_vm7, %v1363_v1 }
 0x75a   :  { %v1394_v7 = vpop.permute.xlu1 %1393 }
 0x75c   :  { %1494 = vmatmul.f32.gmra.mxu3 %v1370_v51  ;;  %1532 = vmatmul.f32.gmra.mxu0 %v1365_v52 }
 0x760   :  { %1974 = vmatmul.msk.f32.gmra.mxu1 %vm838_vm7, %v1366_v53 }
 0x764   :  { %1497 = vmatmul.f32.gmra.mxu3 %v1373_v54  ;;  %1535 = vmatmul.f32.gmra.mxu0 %v1368_v55 }
 0x768   :  { %1975 = vmatmul.msk.f32.gmra.mxu1 %vm838_vm7, %v1369_v8 }
 0x76c   :  { %1500 = vmatmul.f32.gmra.mxu3 %v1376_v9  ;;  %1538 = vmatmul.f32.gmra.mxu0 %v1371_v58 }
 0x770   :  { %1976 = vmatmul.msk.f32.gmra.mxu1 %vm838_vm7, %v1372_v59 }
 0x774   :  { %1503 = vmatmul.f32.gmra.mxu3 %v1379_v60  ;;  %1541 = vmatmul.f32.gmra.mxu0 %v1374_v16 }
 0x778   :  { %1977 = vmatmul.msk.f32.gmra.mxu1 %vm838_vm7, %v1375_v61 }
 0x77c   :  { %1544 = vmatmul.f32.gmra.mxu0 %v1377_v17 }
 0x780   :  { %1978 = vmatmul.msk.f32.gmra.mxu1 %vm838_vm7, %v1378_v62 }
 0x784   :  { %1547 = vmatmul.f32.gmra.mxu0 %v1380_v2 }
 0x788   :  { %1979 = vmatmul.msk.f32.gmra.mxu1 %vm838_vm7, %v1381_v3  ;;  %v1682_v3 = vld [vmem:[%s3185_s14 + $0x10] sm:$0xff] }
 0x7b7   :  { %v1480_v63 = vpop.f32.mrf.mxu3 }
 0x7b8   :  { %v1481_v11 = vadd.f32 %v1480_v63, %v1394_v7  ;;  %v1681_v63 = vld [vmem:[%s3185_s14 + $0x8] sm:$0xff]  ;;  %v1751_v7 = vld [vmem:[%s3188_s17] sm:$0xff] }
 0x7bf   :  { %v1483_v10 = vpop.f32.mrf.mxu3 }
 0x7c0   :  { %v1484_v22 = vadd.f32 %v1483_v10, %v1399_v19  ;;  %v1680_v10 = vld [vmem:[%s3185_s14] sm:$0xff] }
 0x7c1   :  { %v1524_v12 = vpop.f32.mrf.mxu0 }
 0x7c2   :  { %v1525_v13 = vadd.f32 %v1524_v12, %v1481_v11 }
 0x7c5   :  { %v1568_v15 = vpop.f32.mrf.mxu1 }
 0x7c6   :  { %v3088_v18 = vadd.f32 %v1568_v15, %v1525_v13 }
 0x7c7   :  { %v1486_v21 = vpop.f32.mrf.mxu3 }
 0x7c8   :  { %v1487_v30 = vadd.f32 %v1486_v21, %v1404_v29 }
 0x7c9   :  { %v1527_v23 = vpop.f32.mrf.mxu0 }
 0x7ca   :  { %v1528_v20 = vadd.f32 %v1527_v23, %v1484_v22 }
 0x7cd   :  { %v1571_v26 = vpop.f32.mrf.mxu1 }
 0x7ce   :  { %v3090_v28 = vadd.f32 %v1571_v26, %v1528_v20 }
 0x7cf   :  { %v1489_v27 = vpop.f32.mrf.mxu3 }
 0x7d0   :  { %v1490_v47 = vadd.f32 %v1489_v27, %v1409_v4  ;;  %v1683_v4 = vld [vmem:[%s3185_s14 + $0x18] sm:$0xff] }
 0x7d1   :  { %v1530_v31 = vpop.f32.mrf.mxu0 }
 0x7d2   :  { %v1531_v33 = vadd.f32 %v1530_v31, %v1487_v30 }
 0x7d5   :  { %v1574_v32 = vpop.f32.mrf.mxu1 }
 0x7d6   :  { %v3092_v34 = vadd.f32 %v1574_v32, %v1531_v33 }
 0x7d7   :  { %v1492_v35 = vpop.f32.mrf.mxu3 }
 0x7d8   :  { %v1493_v8 = vadd.f32 %v1492_v35, %v1414_v6  ;;  %v1753_v6 = vld [vmem:[%s3188_s17 + $0x10] sm:$0xff] }
 0x7d9   :  { %v1533_v37 = vpop.f32.mrf.mxu0 }
 0x7da   :  { %v1534_v0 = vadd.f32 %v1533_v37, %v1490_v47 }
 0x7dd   :  { %v1577_v38 = vpop.f32.mrf.mxu1 }
 0x7de   :  { %v1578_v52 = vadd.f32 %v1577_v38, %v1534_v0 }
 0x7df   :  { %v1495_v36 = vpop.f32.mrf.mxu3 }
 0x7e0   :  { %v1496_v17 = vadd.f32 %v1495_v36, %v1419_v14 }
 0x7e1   :  { %v1536_v49 = vpop.f32.mrf.mxu0 }
 0x7e2   :  { %v1537_v58 = vadd.f32 %v1536_v49, %v1493_v8  ;;  %v1676_v8 = vld [vmem:[%s3184_s13] sm:$0xff] }
 0x7e5   :  { %v1580_v39 = vpop.f32.mrf.mxu1 }
 0x7e6   :  { %v1581_v16 = vadd.f32 %v1580_v39, %v1537_v58  ;;  %v1677_v58 = vld [vmem:[%s3184_s13 + $0x8] sm:$0xff] }
 0x7e7   :  { %v1498_v40 = vpop.f32.mrf.mxu3 }
 0x7e8   :  { %v1499_v42 = vadd.f32 %v1498_v40, %v1424_v24  ;;  %v1754_v24 = vld [vmem:[%s3188_s17 + $0x18] sm:$0xff] }
 0x7e9   :  { %v1539_v45 = vpop.f32.mrf.mxu0 }
 0x7ea   :  { %v1540_v62 = vadd.f32 %v1539_v45, %v1496_v17  ;;  %v1748_v17 = vld [vmem:[%s3187_s16 + $0x10] sm:$0xff] }
 0x7ed   :  { %v1583_v48 = vpop.f32.mrf.mxu1 }
 0x7ee   :  { %v1584_v2 = vadd.f32 %v1583_v48, %v1540_v62  ;;  %v1749_v62 = vld [vmem:[%s3187_s16 + $0x18] sm:$0xff] }
 0x7ef   :  { %v1501_v44 = vpop.f32.mrf.mxu3 }
 0x7f0   :  { %v1502_v50 = vadd.f32 %v1501_v44, %v1429_v25  ;;  %v1752_v25 = vld [vmem:[%s3188_s17 + $0x8] sm:$0xff] }
 0x7f1   :  { %v1542_v41 = vpop.f32.mrf.mxu0 }
 0x7f2   :  { %v1543_v43 = vadd.f32 %v1542_v41, %v1499_v42 }
 0x7f5   :  { %v1586_v56 = vpop.f32.mrf.mxu1 }
 0x7f6   :  { %v1587_v57 = vadd.f32 %v1586_v56, %v1543_v43 }
 0x7f7   :  { %v1504_v54 = vpop.f32.mrf.mxu3 }
 0x7f8   :  { %1616 = vrot.lane.b32.xlu1 %v1587_v57, %s2302_s2  ;;  %v1505_v9 = vadd.f32 %v1504_v54, %v1434_v5  ;;  %v1894_v5 = vld [vmem:[#allocation2] sm:$0x1] }
 0x7f9   :  { %v1545_v46 = vpop.f32.mrf.mxu0 }
 0x7fa   :  { %v1546_v1 = vadd.f32 %v1545_v46, %v1502_v50 }
 0x7fd   :  { %v1589_v51 = vpop.f32.mrf.mxu1 }
 0x7fe   :  { %v1590_v53 = vadd.f32 %v1589_v51, %v1546_v1 }
 0x800   :  { %1618 = vrot.lane.b32.xlu0 %v1590_v53, %s2302_s2  ;;  %1610 = vrot.lane.b32.xlu1 %v1578_v52, %s2302_s2 }
 0x801   :  { %v1548_v55 = vpop.f32.mrf.mxu0 }
 0x802   :  { %v1549_v59 = vadd.f32 %v1548_v55, %v1505_v9 }
 0x805   :  { %v1592_v60 = vpop.f32.mrf.mxu1 }
 0x806   :  { %v1593_v61 = vadd.f32 %v1592_v60, %v1549_v59  ;;  %v1678_v59 = vld [vmem:[%s3184_s13 + $0x10] sm:$0xff]  ;;  %v1679_v60 = vld [vmem:[%s3184_s13 + $0x18] sm:$0xff] }
 0x808   :  { %1620 = vrot.lane.b32.xlu2 %v1593_v61, %s2302_s2  ;;  %1612 = vrot.lane.b32.xlu0 %v1581_v16, %s2302_s2 }
 0x809   :  { %1604 = vrot.lane.b32.xlu1 %v3088_v18, %s2302_s2 }
 0x810   :  { %1614 = vrot.lane.b32.xlu2 %v1584_v2, %s2302_s2  ;;  %1606 = vrot.lane.b32.xlu0 %v3090_v28, %s2302_s2 }
 0x811   :  { %1696 = vperm.xlu1 %2061, %v1682_v3  }
 0x818   :  { %1608 = vrot.lane.b32.xlu2 %v3092_v34, %s2302_s2  ;;  %1772 = vperm.xlu0 %2060, %v1754_v24  }
 0x819   :  { %1762 = vperm.xlu1 %2061, %v1752_v25  }
 0x820   :  { %1701 = vperm.xlu2 %2062, %v1683_v4   ;;  %1691 = vperm.xlu0 %2060, %v1681_v63  }
 0x821   :  { %1897 = vperm.xlu1 %2061, %v1894_v5  }
 0x828   :  { %1767 = vperm.xlu2 %2062, %v1753_v6   ;;  %1757 = vperm.xlu0 %2060, %v1751_v7  }
 0x830   :  { %1686 = vperm.xlu2 %2062, %v1680_v10  }
 0x862   :  { %v1621_v11 = vpop.permute.xlu2 %1620 }
 0x863   :  { %v1639_v12 = vadd.f32 %v1621_v11, %v1593_v61  ;;  %v1747_v61 = vld [vmem:[%s3187_s16 + $0x8] sm:$0xff] }
 0x865   :  { %v1648_v13 = vmul.f32 0.5, %v1639_v12 }
 0x867   :  { %vm1657_vm7 = vcmp.ge.f32.partialorder %v1648_v13, 0.0  ;;  %v1666_v14 = vmul.f32 0.01, %v1648_v13 }
 0x869   :  { %v1675_v15 = vsel %vm1657_vm7, %v1648_v13, %v1666_v14  ;;  %vm1847_vm7 = vcmask 261120  }
 0x86a   :  { %1724 = vmatpush.msra.mxu2 %v1675_v15  ;;  %v1617_v19 = vpop.permute.xlu1 %1616  ;;  %v1615_v21 = vpop.permute.xlu2 %1614 }
 0x86b   :  { %v1637_v22 = vadd.f32 %v1617_v19, %v1587_v57  ;;  %v1636_v23 = vadd.f32 %v1615_v21, %v1584_v2 }
 0x86d   :  { %v1646_v29 = vmul.f32 0.5, %v1637_v22  ;;  %v1645_v30 = vmul.f32 0.5, %v1636_v23 }
 0x86f   :  { %v1664_v32 = vmul.f32 0.01, %v1646_v29  ;;  %vm1655_vm1 = vcmp.ge.f32.partialorder %v1646_v29, 0.0  ;;  %v1663_v38 = vmul.f32 0.01, %v1645_v30  ;;  %vm1654_vm2 = vcmp.ge.f32.partialorder %v1645_v30, 0.0 }
 0x871   :  { %v1673_v48 = vsel %vm1655_vm1, %v1646_v29, %v1664_v32  ;;  %v1672_v44 = vsel %vm1654_vm2, %v1645_v30, %v1663_v38  ;;  %v1821_v30 = vld [vmem:[%s3189_s18] sm:$0x1] }
 0x872   :  { %v1619_v20 = vpop.permute.xlu0 %1618  ;;  %v1611_v26 = vpop.permute.xlu1 %1610 }
 0x873   :  { %v1638_v27 = vadd.f32 %v1619_v20, %v1590_v53  ;;  %v1609_v33 = vpop.permute.xlu2 %1608  ;;  %v1634_v37 = vadd.f32 %v1611_v26, %v1578_v52 }
 0x874   :  { %v1633_v36 = vadd.f32 %v1609_v33, %v3092_v34 }
 0x875   :  { %v1647_v31 = vmul.f32 0.5, %v1638_v27  ;;  %v1643_v45 = vmul.f32 0.5, %v1634_v37 }
 0x876   :  { %v1642_v42 = vmul.f32 0.5, %v1633_v36 }
 0x877   :  { %v1665_v35 = vmul.f32 0.01, %v1647_v31  ;;  %vm1656_vm12 = vcmp.ge.f32.partialorder %v1647_v31, 0.0  ;;  %v1661_v56 = vmul.f32 0.01, %v1643_v45  ;;  %vm1652_vm4 = vcmp.ge.f32.partialorder %v1643_v45, 0.0 }
 0x878   :  { %v1660_v34 = vmul.f32 0.01, %v1642_v42  ;;  %vm1651_vm5 = vcmp.ge.f32.partialorder %v1642_v42, 0.0 }
 0x879   :  { %v1674_v49 = vsel %vm1656_vm12, %v1647_v31, %v1665_v35  ;;  %v1670_v51 = vsel %vm1652_vm4, %v1643_v45, %v1661_v56  ;;  %v1834_v56 = vld [vmem:[%s3190_s19] sm:$0x1]  ;;  %s2304_s19 = smov [#allocation3]  }
 0x87a   :  { %1725 = vmatpush.msra.mxu2 %v1674_v49  ;;  %v1613_v39 = vpop.permute.xlu0 %1612  ;;  %v1669_v53 = vsel %vm1651_vm5, %v1642_v42, %v1660_v34  ;;  %s1928_s20 = sshll.u32 %s2304_s19, 4  ;;  %s1929_s20 = int_to_ptr.vmem [resolvable:$true] %s1928_s20 }
 0x87b   :  { %v1635_v40 = vadd.f32 %v1613_v39, %v1581_v16  ;;  %v1605_v41 = vpop.permute.xlu1 %1604  ;;  %v1746_v16 = vld [vmem:[%s3187_s16] sm:$0xff]  ;;  %v1702_v3 = vpop.permute.xlu2 %1701 }
 0x87c   :  { %1726 = vmatpush.msra.mxu2 %v1673_v48  ;;  %v1631_v46 = vadd.f32 %v1605_v41, %v3088_v18 }
 0x87d   :  { %v1644_v43 = vmul.f32 0.5, %v1635_v40 }
 0x87e   :  { %1727 = vmatpush.msra.mxu2 %v1672_v44  ;;  %v1640_v0 = vmul.f32 0.5, %v1631_v46 }
 0x87f   :  { %v1662_v57 = vmul.f32 0.01, %v1644_v43  ;;  %vm1653_vm3 = vcmp.ge.f32.partialorder %v1644_v43, 0.0 }
 0x880   :  { %v1658_v54 = vmul.f32 0.01, %v1640_v0  ;;  %vm1649_vm8 = vcmp.ge.f32.partialorder %v1640_v0, 0.0 }
 0x881   :  { %v1671_v47 = vsel %vm1653_vm3, %v1644_v43, %v1662_v57 }
 0x882   :  { %1728 = vmatpush.msra.mxu2 %v1671_v47  ;;  %v1607_v50 = vpop.permute.xlu0 %1606  ;;  %v1667_v9 = vsel %vm1649_vm8, %v1640_v0, %v1658_v54  ;;  %vm1921_vm8 = vcmask 8192  }
 0x883   :  { %v1632_v1 = vadd.f32 %v1607_v50, %v3090_v28  ;;  %v1750_v28 = vld [vmem:[%s3186_s15] sm:$0x7f]  ;;  %v1768_v4 = vpop.permute.xlu2 %1767  ;;  %v1697_v5 = vpop.permute.xlu1 %1696 }
 0x884   :  { %1729 = vmatpush.msra.mxu2 %v1670_v51 }
 0x885   :  { %v1641_v52 = vmul.f32 0.5, %v1632_v1 }
 0x886   :  { %1730 = vmatpush.msra.mxu2 %v1669_v53 }
 0x887   :  { %v1659_v55 = vmul.f32 0.01, %v1641_v52  ;;  %vm1650_vm6 = vcmp.ge.f32.partialorder %v1641_v52, 0.0 }
 0x889   :  { %v1668_v18 = vsel %vm1650_vm6, %v1641_v52, %v1659_v55 }
 0x88a   :  { %1731 = vmatpush.msra.mxu2 %v1668_v18  ;;  %v1773_v25 = vpop.permute.xlu0 %1772 }
 0x88b   :  { %v1687_v13 = vpop.permute.xlu2 %1686  ;;  %v1763_v35 = vpop.permute.xlu1 %1762 }
 0x88c   :  { %1732 = vmatpush.msra.mxu2 %v1667_v9 }
 0x88d   :  { %1980 = vmatmul.msk.f32.vlgmr.msra.gmra.mxu2 %vm1704_vm9, %v1676_v8 }
 0x88e   :  { %1984 = vmatpush.msk.msrb.mxu2 %vm1788_vm10, %v1750_v28 }
 0x892   :  { %v1692_v7 = vpop.permute.xlu0 %1691 }
 0x893   :  { %v1898_v46 = vpop.permute.xlu1 %1897 }
 0x894   :  { %v1900_v50 = vperm.slane %v1898_v46, 0 }
 0x895   :  { %1981 = vmatmul.msk.f32.gmra.mxu2 %vm1704_vm9, %v1677_v58 }
 0x89a   :  { %v1758_v49 = vpop.permute.xlu0 %1757 }
 0x89d   :  { %1982 = vmatmul.msk.f32.gmra.mxu2 %vm1704_vm9, %v1678_v59 }
 0x8a5   :  { %1983 = vmatmul.msk.f32.gmra.mxu2 %vm1704_vm9, %v1679_v60 }
 0x8ad   :  { %1985 = vmatmul.msk.f32.vlgmr.msrb.gmra.mxu2 %vm1775_vm11, %v1746_v16 }
 0x8b5   :  { %1986 = vmatmul.msk.f32.gmra.mxu2 %vm1775_vm11, %v1747_v61 }
 0x8bd   :  { %1987 = vmatmul.msk.f32.gmra.mxu2 %vm1775_vm11, %v1748_v17 }
 0x8c5   :  { %1988 = vmatmul.msk.f32.gmra.mxu2 %vm1775_vm11, %v1749_v62 }
 0x910   :  { %v1734_v2 = vpop.f32.mrf.mxu2 }
 0x911   :  { %v1735_v14 = vadd.f32 %v1734_v2, %v1687_v13 }
 0x913   :  { %v1826_v23 = vmul.f32 0.01, %v1735_v14  ;;  %vm1822_vm0 = vcmp.ge.f32.partialorder %v1735_v14, 0.0 }
 0x915   :  { %v1830_v27 = vsel %vm1822_vm0, %v1735_v14, %v1826_v23 }
 0x918   :  { %v1737_v24 = vpop.f32.mrf.mxu2 }
 0x919   :  { %v1738_v11 = vadd.f32 %v1737_v24, %v1692_v7 }
 0x91b   :  { %v1827_v21 = vmul.f32 0.01, %v1738_v11  ;;  %vm1823_vm15 = vcmp.ge.f32.partialorder %v1738_v11, 0.0 }
 0x91d   :  { %v1831_v29 = vsel %vm1823_vm15, %v1738_v11, %v1827_v21 }
 0x920   :  { %v1740_v63 = vpop.f32.mrf.mxu2 }
 0x921   :  { %v1741_v6 = vadd.f32 %v1740_v63, %v1697_v5 }
 0x923   :  { %v1828_v15 = vmul.f32 0.01, %v1741_v6  ;;  %vm1824_vm14 = vcmp.ge.f32.partialorder %v1741_v6, 0.0 }
 0x925   :  { %v1832_v20 = vsel %vm1824_vm14, %v1741_v6, %v1828_v15 }
 0x928   :  { %v1743_v10 = vpop.f32.mrf.mxu2 }
 0x929   :  { %v1744_v12 = vadd.f32 %v1743_v10, %v1702_v3 }
 0x92b   :  { %vm1825_vm13 = vcmp.ge.f32.partialorder %v1744_v12, 0.0  ;;  %v1829_v19 = vmul.f32 0.01, %v1744_v12 }
 0x92d   :  { %v1833_v22 = vsel %vm1825_vm13, %v1744_v12, %v1829_v19 }
 0x92e   :  { %1886 = vmatpush.msra.mxu2 %v1833_v22 }
 0x930   :  { %v1809_v26 = vpop.f32.mrf.mxu2  ;;  %1887 = vmatpush.msra.mxu2 %v1832_v20 }
 0x931   :  { %v1810_v39 = vadd.f32 %v1809_v26, %v1758_v49 }
 0x932   :  { %1888 = vmatpush.msra.mxu2 %v1831_v29 }
 0x933   :  { %v1839_v42 = vmul.f32 0.01, %v1810_v39  ;;  %vm1835_vm3 = vcmp.ge.f32.partialorder %v1810_v39, 0.0 }
 0x934   :  { %1889 = vmatpush.msra.mxu2 %v1830_v27 }
 0x935   :  { %1990 = vmatmul.msk.f32.vlgmr.msra.gmra.mxu2 %vm1847_vm7, %v1821_v30  ;;  %v1843_v57 = vsel %vm1835_vm3, %v1810_v39, %v1839_v42 }
 0x938   :  { %v1812_v31 = vpop.f32.mrf.mxu2 }
 0x939   :  { %v1813_v38 = vadd.f32 %v1812_v31, %v1763_v35 }
 0x93b   :  { %v1840_v48 = vmul.f32 0.01, %v1813_v38  ;;  %vm1836_vm2 = vcmp.ge.f32.partialorder %v1813_v38, 0.0 }
 0x93d   :  { %v1844_v44 = vsel %vm1836_vm2, %v1813_v38, %v1840_v48 }
 0x940   :  { %v1815_v33 = vpop.f32.mrf.mxu2 }
 0x941   :  { %v1816_v32 = vadd.f32 %v1815_v33, %v1768_v4 }
 0x943   :  { %v1841_v45 = vmul.f32 0.01, %v1816_v32  ;;  %vm1837_vm1 = vcmp.ge.f32.partialorder %v1816_v32, 0.0 }
 0x945   :  { %v1845_v43 = vsel %vm1837_vm1, %v1816_v32, %v1841_v45 }
 0x948   :  { %v1818_v37 = vpop.f32.mrf.mxu2 }
 0x949   :  { %v1819_v36 = vadd.f32 %v1818_v37, %v1773_v25 }
 0x94b   :  { %vm1838_vm12 = vcmp.ge.f32.partialorder %v1819_v36, 0.0  ;;  %v1842_v40 = vmul.f32 0.01, %v1819_v36 }
 0x94d   :  { %v1846_v41 = vsel %vm1838_vm12, %v1819_v36, %v1842_v40 }
 0x94e   :  { %1863 = vmatpush.msrb.mxu3 %v1846_v41 }
 0x950   :  { %1864 = vmatpush.msrb.mxu3 %v1845_v43 }
 0x952   :  { %1865 = vmatpush.msrb.mxu3 %v1844_v44 }
 0x954   :  { %1866 = vmatpush.msrb.mxu3 %v1843_v57 }
 0x955   :  { %1989 = vmatmul.msk.f32.vlgmr.msrb.gmra.mxu3 %vm1847_vm7, %v1834_v56 }
 0x9b8   :  { %v1891_v34 = vpop.f32.mrf.mxu2 }
 0x9d8   :  { %v1868_v47 = vpop.f32.mrf.mxu3 }
 0x9d9   :  { %v1892_v0 = vadd.f32 %v1891_v34, %v1868_v47 }
 0x9db   :  { %v1901_v1 = vadd.f32 %v1900_v50, %v1892_v0 }
 0x9dd   :  { %v1991_v51 = vmul.f32 -1.442695, %v1901_v1 }
 0x9df   :  { %2267 = vpow2.f32 %v1991_v51 }
 0x9e5   :  { %v2268_v52 = vpop.eup %2267 }
 0x9e6   :  { %v1905_v53 = vadd.f32 1.0, %v2268_v52 }
 0x9e8   :  { %2269 = vrcp.f32 %v1905_v53  ;;  %v1917_v8 = vand.u32 2147483648, %v1905_v53  ;;  %v1915_v28 = vand.u32 2147483647, %v1905_v53  ;;  %vm1911_vm5 = vweird.f32 %v1905_v53 }
 0x9ea   :  { %v1918_v59 = vor.u32 1.1754944e-38, %v1917_v8  ;;  %vm1916_vm9 = vcmp.eq.f32.partialorder %v1915_v28, 8.507059e+37 }
 0x9ee   :  { %v2270_v54 = vpop.eup %2269 }
 0x9ef   :  { %v1907_v55 = vmul.f32 %v2270_v54, %v1905_v53  ;;  %vm1912_vm4 = vweird.f32 %v2270_v54 }
 0x9f0   :  { %vm1913_vm6 = vmor %vm1911_vm5, %vm1912_vm4 }
 0x9f1   :  { %v1908_v18 = vsub.f32 1.0, %v1907_v55 }
 0x9f3   :  { %v1909_v9 = vmul.f32 %v2270_v54, %v1908_v18 }
 0x9f5   :  { %v1910_v58 = vadd.f32 %v2270_v54, %v1909_v9 }
 0x9f7   :  { %v1914_v60 = vsel %vm1913_vm6, %v2270_v54, %v1910_v58 }
 0x9f8   :  { %v1919_v16 = vsel %vm1916_vm9, %v1918_v59, %v1914_v60 }
 0x9f9   :  { %1922 = vst.msk [vmem:[#allocation3] sm:$0x1] %vm1921_vm8, %v1919_v16 }
 0x9fa   :  { %1933 = dma.vmem_to_hbm [thread:$0]  %s1929_s20, 16, %s1931_s27, [#allocation4]  }
 0x9fb   :  { %2295 = dma.done.wait [#allocation4], 16  }
 0x9fc   :  { %2296 = vsyncadd [#allocation4], 4294967280 }
 0x9fd   :  { %1938 = vsyncpa [#allocation4], 1 }

</bundles_post_ra>
